<compile_context>
chip_gen: v7x
topology: tpu7x:2x2x1
jax: 0.10.0
libtpu: 0.0.40
codegen_flags: <defaults>
</compile_context>

<pallas_src>
import jax
import jax.numpy as jnp
from jax.experimental import pallas as pl
from jax.experimental.pallas import tpu as pltpu

# ------------------------- model config (small) -------------------------
B, S = 2, 8            # batch, sequence length
R = B * S              # fused row dimension
H = 32                 # hidden size
NH, DH = 4, 8          # heads, head dim
FF = 64                # intermediate size
LAYERS = 2
VOCAB = 32
NUM_LABELS = 4
PAD = 128              # lane-dense output slab width (sliced outside)
LN_EPS = 1e-12
NEG_BIG = -1e9         # cross-batch block-diagonal mask value


# ----------------------------- in-kernel math -----------------------------
def _erf(x):
    # Abramowitz & Stegun 7.1.26 (|err| < 1.5e-7) -> exact-GELU flavor using
    # only VPU ops + EUP exp/reciprocal.
    p = 0.3275911
    a1, a2, a3, a4, a5 = (0.254829592, -0.284496736, 1.421413741,
                          -1.453152027, 1.061405429)
    sgn = jnp.where(x >= 0.0, 1.0, -1.0)
    ax = jnp.abs(x)
    t = pl.reciprocal(1.0 + p * ax, approx=True)
    poly = ((((a5 * t + a4) * t + a3) * t + a2) * t + a1) * t
    return sgn * (1.0 - poly * jnp.exp(-ax * ax))


def _gelu_exact(x):
    return 0.5 * x * (1.0 + _erf(x * 0.7071067811865476))


def _layernorm(x, g, b):
    mu = jnp.mean(x, axis=-1, keepdims=True)
    var = jnp.mean((x - mu) ** 2, axis=-1, keepdims=True)
    return (x - mu) * jax.lax.rsqrt(var + LN_EPS) * g + b


def _layer(x, bias_full, wqkv, bqkv, wo, bo, ln1g, ln1b,
           w1, b1, w2, b2, ln2g, ln2b):
    """One transformer layer on the fused (R, H) slab. bias_full: (R, R)."""
    xb = x.astype(jnp.bfloat16)
    # fused QKV projection: one (R,H) x (H,3H) matmul (scale folded into Q cols)
    qkv = jnp.dot(xb, wqkv, preferred_element_type=jnp.float32) + bqkv  # (R,3H)
    q = qkv[:, :H].astype(jnp.bfloat16)
    k = qkv[:, H:2 * H].astype(jnp.bfloat16)
    v = qkv[:, 2 * H:].astype(jnp.bfloat16)

    # per-head attention over the fused (R,R) block-diagonal score; head output
    # folded directly into the output projection (no lane concat, no transpose)
    attn = None
    for h in range(NH):
        sl = slice(h * DH, (h + 1) * DH)
        qh, kh, vh = q[:, sl], k[:, sl], v[:, sl]
        # scores = qh @ kh^T via NT dot_general (no materialized transpose)
        s = jax.lax.dot_general(qh, kh, (((1,), (1,)), ((), ())),
                                preferred_element_type=jnp.float32)      # (R,R)
        s = s + bias_full
        s = s - jnp.max(s, axis=-1, keepdims=True)
        e = jnp.exp(s)
        p = e * pl.reciprocal(jnp.sum(e, axis=-1, keepdims=True), approx=True)
        ctx = jnp.dot(p.astype(jnp.bfloat16), vh,
                      preferred_element_type=jnp.float32)                # (R,DH)
        term = jnp.dot(ctx.astype(jnp.bfloat16), wo[sl, :],
                       preferred_element_type=jnp.float32)               # (R,H)
        attn = term if attn is None else attn + term
    attn = attn + bo

    h1 = _layernorm(attn + x, ln1g, ln1b)

    ff = jnp.dot(h1.astype(jnp.bfloat16), w1,
                 preferred_element_type=jnp.float32) + b1
    ff = _gelu_exact(ff)
    ff = jnp.dot(ff.astype(jnp.bfloat16), w2,
                 preferred_element_type=jnp.float32) + b2
    return _layernorm(ff + h1, ln2g, ln2b)


# ------------------------------ fused kernel ------------------------------
def _forward_kernel(x_ref, bias_ref, embg_ref, embb_ref,
                    wqkv_ref, bqkv_ref, wo_ref, bo_ref, ln1g_ref, ln1b_ref,
                    w1_ref, b1_ref, w2_ref, b2_ref, ln2g_ref, ln2b_ref,
                    wc_ref, emb_ref, logits_ref):
    # embedding LayerNorm
    x = _layernorm(x_ref[...], embg_ref[...], embb_ref[...])            # (R,H)
    bias_full = bias_ref[...]                                           # (R,R)

    # all layers, statically unrolled; weights stay VMEM-resident
    for l in range(LAYERS):
        x = _layer(x, bias_full,
                   wqkv_ref[l], bqkv_ref[l], wo_ref[l], bo_ref[l],
                   ln1g_ref[l], ln1b_ref[l], w1_ref[l], b1_ref[l],
                   w2_ref[l], b2_ref[l], ln2g_ref[l], ln2b_ref[l])

    # head: mean over tokens 1: per batch element
    # (matches torch.mean(hidden[:, 1:], dim=1); padded tokens are NOT masked,
    #  just like the reference).
    pooled = []
    for b in range(B):
        blk = x[b * S:(b + 1) * S, :]                                   # (S,H)
        pooled.append(jnp.sum(blk, axis=0, keepdims=True) - blk[0:1, :])
    pooled = jnp.concatenate(pooled, axis=0) * (1.0 / (S - 1))          # (B,H)

    # TODO(synk): Dropout(p=0.1) is identity in eval mode; training-mode RNG
    # dropout is not implemented.
    nrm = jnp.sqrt(jnp.sum(pooled * pooled, axis=-1, keepdims=True))
    z = pooled * pl.reciprocal(jnp.maximum(nrm, 1e-12), approx=True)    # F.normalize

    logits_ref[...] = jnp.dot(z.astype(jnp.bfloat16), wc_ref[...],
                              preferred_element_type=jnp.float32)       # (B,PAD)
    emb_ref[...] = jnp.concatenate(
        [pooled, jnp.zeros((B, PAD - H), jnp.float32)], axis=-1)        # (B,PAD)


def bert_forward_fused(x_flat, bias_full, params):
    """Single pallas_call for the whole forward pass (no grid, all in VMEM)."""
    args = (x_flat, bias_full, params["emb_ln_g"], params["emb_ln_b"],
            params["wqkv"], params["bqkv"], params["wo"], params["bo"],
            params["ln1_g"], params["ln1_b"], params["w1"], params["b1"],
            params["w2"], params["b2"], params["ln2_g"], params["ln2_b"],
            params["classifier_w"])
    vmem = lambda: pl.BlockSpec(memory_space=pltpu.MemorySpace.VMEM)
    return pl.pallas_call(
        _forward_kernel,
        out_shape=(jax.ShapeDtypeStruct((B, PAD), jnp.float32),   # pooled emb (padded)
                   jax.ShapeDtypeStruct((B, PAD), jnp.float32)),  # logits (padded)
        in_specs=[vmem() for _ in range(len(args))],
        out_specs=(vmem(), vmem()),
    )(*args)


# ------------------------------ parameter init ------------------------------
def init_params(key):
    # TODO(synk): pretrained AutoModelForMaskedLM weights are replaced by a
    # deterministic synthetic init (no file/network access allowed).
    def nrm(k, shape):
        return (0.02 * jax.random.normal(k, shape)).astype(jnp.float32)

    keys = iter(jax.random.split(key, 32))
    scale = 1.0 / (DH ** 0.5)

    names = ("wqkv", "bqkv", "wo", "bo", "ln1_g", "ln1_b",
             "w1", "b1", "w2", "b2", "ln2_g", "ln2_b")
    acc = {n: [] for n in names}
    for _ in range(LAYERS):
        # fold 1/sqrt(DH) into the Q columns (and Q bias) of the packed QKV
        wq = nrm(next(keys), (H, H)) * scale
        wk = nrm(next(keys), (H, H))
        wv = nrm(next(keys), (H, H))
        bq = jnp.zeros((1, H), jnp.float32) * scale
        acc["wqkv"].append(jnp.concatenate([wq, wk, wv], axis=1))
        acc["bqkv"].append(jnp.concatenate(
            [bq, jnp.zeros((1, 2 * H), jnp.float32)], axis=1))
        acc["wo"].append(nrm(next(keys), (H, H)))
        acc["bo"].append(jnp.zeros((1, H), jnp.float32))
        acc["ln1_g"].append(jnp.ones((1, H), jnp.float32))
        acc["ln1_b"].append(jnp.zeros((1, H), jnp.float32))
        acc["w1"].append(nrm(next(keys), (H, FF)))
        acc["b1"].append(jnp.zeros((1, FF), jnp.float32))
        acc["w2"].append(nrm(next(keys), (FF, H)))
        acc["b2"].append(jnp.zeros((1, H), jnp.float32))
        acc["ln2_g"].append(jnp.ones((1, H), jnp.float32))
        acc["ln2_b"].append(jnp.zeros((1, H), jnp.float32))

    bf16_names = {"wqkv", "wo", "w1", "w2"}
    stacked = {n: jnp.stack(acc[n]).astype(
        jnp.bfloat16 if n in bf16_names else jnp.float32) for n in names}

    wc = nrm(next(keys), (H, NUM_LABELS))                 # Linear(H, L, bias=False)
    wc_pad = jnp.zeros((H, PAD), jnp.float32).at[:, :NUM_LABELS].set(wc)

    params = {
        "word_emb": nrm(next(keys), (VOCAB, H)),
        "pos_emb": nrm(next(keys), (S, H)),
        "type_emb": nrm(next(keys), (2, H)),
        "emb_ln_g": jnp.ones((1, H), jnp.float32),
        "emb_ln_b": jnp.zeros((1, H), jnp.float32),
        "classifier_w": wc_pad.astype(jnp.bfloat16),      # lane-padded to 128
    }
    params.update(stacked)
    return params


# --------------------------------- forward ---------------------------------
@jax.jit
def bert_for_ot_forward(params, input_ids, attention_mask):
    Bd, Sd = input_ids.shape
    # embeddings (table gather + adds are XLA glue)
    x = (jnp.take(params["word_emb"], input_ids, axis=0)
         + params["pos_emb"][None, :Sd, :]
         + params["type_emb"][0][None, None, :])
    x_flat = x.reshape(Bd * Sd, H)

    # block-diagonal additive bias for the fused (B*S, B*S) attention score:
    # padding-key bias (-1e4) within a batch, NEG_BIG across batches.
    key_bias = (1.0 - attention_mask.astype(jnp.float32)) * -1e4        # (B,S)
    same = jnp.eye(Bd, dtype=jnp.float32)[:, None, :, None]             # (B,1,B,1)
    bias_full = jnp.broadcast_to(
        same * key_bias[None, None, :, :] + (1.0 - same) * NEG_BIG,
        (Bd, Sd, Bd, Sd)).reshape(Bd * Sd, Bd * Sd)

    emb_pad, logits_pad = bert_forward_fused(x_flat, bias_full, params)
    cls_embedding = emb_pad[:, :H]                    # (B, H) un-normalized mean
    logits = logits_pad[:, :NUM_LABELS]               # (B, NUM_LABELS)
    return cls_embedding, logits


# ----------------------------------- main -----------------------------------
if __name__ == "__main__":
    key = jax.random.PRNGKey(0)
    k_param, k_ids = jax.random.split(key)
    params = init_params(k_param)

    input_ids = jax.random.randint(k_ids, (B, S), 0, VOCAB, dtype=jnp.int32)
    attention_mask = jnp.ones((B, S), dtype=jnp.int32)

    cls_embedding, logits = bert_for_ot_forward(params, input_ids, attention_mask)
    jax.block_until_ready((cls_embedding, logits))

    assert cls_embedding.shape == (B, H)
    assert logits.shape == (B, NUM_LABELS)
    print("KERNEL_OK")
</pallas_src>

<mosaic_0001>
module attributes {stable_mosaic.version = 11 : i64} {
  func.func @_forward_kernel(%arg0: memref<16x32xf32, #tpu.memory_space<vmem>>, %arg1: memref<16x16xf32, #tpu.memory_space<vmem>>, %arg2: memref<1x32xf32, #tpu.memory_space<vmem>>, %arg3: memref<1x32xf32, #tpu.memory_space<vmem>>, %arg4: memref<2x32x96xbf16, #tpu.memory_space<vmem>>, %arg5: memref<2x1x96xf32, #tpu.memory_space<vmem>>, %arg6: memref<2x32x32xbf16, #tpu.memory_space<vmem>>, %arg7: memref<2x1x32xf32, #tpu.memory_space<vmem>>, %arg8: memref<2x1x32xf32, #tpu.memory_space<vmem>>, %arg9: memref<2x1x32xf32, #tpu.memory_space<vmem>>, %arg10: memref<2x32x64xbf16, #tpu.memory_space<vmem>>, %arg11: memref<2x1x64xf32, #tpu.memory_space<vmem>>, %arg12: memref<2x64x32xbf16, #tpu.memory_space<vmem>>, %arg13: memref<2x1x32xf32, #tpu.memory_space<vmem>>, %arg14: memref<2x1x32xf32, #tpu.memory_space<vmem>>, %arg15: memref<2x1x32xf32, #tpu.memory_space<vmem>>, %arg16: memref<32x128xbf16, #tpu.memory_space<vmem>>, %arg17: memref<2x128xf32, #tpu.memory_space<vmem>>, %arg18: memref<2x128xf32, #tpu.memory_space<vmem>>) attributes {dimension_semantics = [], scalar_prefetch = 0 : i64, scratch_operands = 0 : i64, tpu.core_type = #tpu.core_type<tc>} {
    %c0 = arith.constant 0 : index
    %c0_0 = arith.constant 0 : index
    %0 = vector.load %arg0[%c0, %c0_0] : memref<16x32xf32, #tpu.memory_space<vmem>>, vector<16x32xf32>
    %c0_1 = arith.constant 0 : index
    %c0_2 = arith.constant 0 : index
    %1 = vector.load %arg2[%c0_1, %c0_2] : memref<1x32xf32, #tpu.memory_space<vmem>>, vector<1x32xf32>
    %c0_3 = arith.constant 0 : index
    %c0_4 = arith.constant 0 : index
    %2 = vector.load %arg3[%c0_3, %c0_4] : memref<1x32xf32, #tpu.memory_space<vmem>>, vector<1x32xf32>
    %cst = arith.constant dense<0.000000e+00> : vector<16xf32>
    %3 = vector.multi_reduction <add>, %0, %cst [1] : vector<16x32xf32> to vector<16xf32>
    %4 = vector.shape_cast %3 : vector<16xf32> to vector<16x1xf32>
    %cst_5 = arith.constant 3.200000e+01 : f32
    %5 = vector.broadcast %cst_5 : f32 to vector<16x1xf32>
    %6 = arith.divf %4, %5 : vector<16x1xf32>
    %7 = vector.broadcast %6 : vector<16x1xf32> to vector<16x32xf32>
    %8 = arith.subf %0, %7 : vector<16x32xf32>
    %9 = arith.mulf %8, %8 : vector<16x32xf32>
    %cst_6 = arith.constant dense<0.000000e+00> : vector<16xf32>
    %10 = vector.multi_reduction <add>, %9, %cst_6 [1] : vector<16x32xf32> to vector<16xf32>
    %11 = vector.shape_cast %10 : vector<16xf32> to vector<16x1xf32>
    %cst_7 = arith.constant 3.200000e+01 : f32
    %12 = vector.broadcast %cst_7 : f32 to vector<16x1xf32>
    %13 = arith.divf %11, %12 : vector<16x1xf32>
    %14 = vector.broadcast %6 : vector<16x1xf32> to vector<16x32xf32>
    %15 = arith.subf %0, %14 : vector<16x32xf32>
    %cst_8 = arith.constant 9.99999996E-13 : f32
    %16 = vector.broadcast %cst_8 : f32 to vector<16x1xf32>
    %17 = arith.addf %13, %16 : vector<16x1xf32>
    %18 = math.rsqrt %17 : vector<16x1xf32>
    %19 = vector.broadcast %18 : vector<16x1xf32> to vector<16x32xf32>
    %20 = arith.mulf %15, %19 : vector<16x32xf32>
    %21 = vector.broadcast %1 : vector<1x32xf32> to vector<16x32xf32>
    %22 = arith.mulf %20, %21 : vector<16x32xf32>
    %23 = vector.broadcast %2 : vector<1x32xf32> to vector<16x32xf32>
    %24 = arith.addf %22, %23 : vector<16x32xf32>
    %c0_9 = arith.constant 0 : index
    %c0_10 = arith.constant 0 : index
    %25 = vector.load %arg1[%c0_9, %c0_10] : memref<16x16xf32, #tpu.memory_space<vmem>>, vector<16x16xf32>
    %c0_11 = arith.constant 0 : index
    %c0_12 = arith.constant 0 : index
    %c0_13 = arith.constant 0 : index
    %26 = vector.load %arg4[%c0_11, %c0_12, %c0_13] : memref<2x32x96xbf16, #tpu.memory_space<vmem>>, vector<1x32x96xbf16>
    %27 = vector.shape_cast %26 : vector<1x32x96xbf16> to vector<32x96xbf16>
    %c0_14 = arith.constant 0 : index
    %c0_15 = arith.constant 0 : index
    %c0_16 = arith.constant 0 : index
    %28 = vector.load %arg5[%c0_14, %c0_15, %c0_16] : memref<2x1x96xf32, #tpu.memory_space<vmem>>, vector<1x1x96xf32>
    %29 = vector.shape_cast %28 : vector<1x1x96xf32> to vector<1x96xf32>
    %c0_17 = arith.constant 0 : index
    %c0_18 = arith.constant 0 : index
    %c0_19 = arith.constant 0 : index
    %30 = vector.load %arg6[%c0_17, %c0_18, %c0_19] : memref<2x32x32xbf16, #tpu.memory_space<vmem>>, vector<1x32x32xbf16>
    %31 = vector.shape_cast %30 : vector<1x32x32xbf16> to vector<32x32xbf16>
    %c0_20 = arith.constant 0 : index
    %c0_21 = arith.constant 0 : index
    %c0_22 = arith.constant 0 : index
    %32 = vector.load %arg7[%c0_20, %c0_21, %c0_22] : memref<2x1x32xf32, #tpu.memory_space<vmem>>, vector<1x1x32xf32>
    %33 = vector.shape_cast %32 : vector<1x1x32xf32> to vector<1x32xf32>
    %c0_23 = arith.constant 0 : index
    %c0_24 = arith.constant 0 : index
    %c0_25 = arith.constant 0 : index
    %34 = vector.load %arg8[%c0_23, %c0_24, %c0_25] : memref<2x1x32xf32, #tpu.memory_space<vmem>>, vector<1x1x32xf32>
    %35 = vector.shape_cast %34 : vector<1x1x32xf32> to vector<1x32xf32>
    %c0_26 = arith.constant 0 : index
    %c0_27 = arith.constant 0 : index
    %c0_28 = arith.constant 0 : index
    %36 = vector.load %arg9[%c0_26, %c0_27, %c0_28] : memref<2x1x32xf32, #tpu.memory_space<vmem>>, vector<1x1x32xf32>
    %37 = vector.shape_cast %36 : vector<1x1x32xf32> to vector<1x32xf32>
    %c0_29 = arith.constant 0 : index
    %c0_30 = arith.constant 0 : index
    %c0_31 = arith.constant 0 : index
    %38 = vector.load %arg10[%c0_29, %c0_30, %c0_31] : memref<2x32x64xbf16, #tpu.memory_space<vmem>>, vector<1x32x64xbf16>
    %39 = vector.shape_cast %38 : vector<1x32x64xbf16> to vector<32x64xbf16>
    %c0_32 = arith.constant 0 : index
    %c0_33 = arith.constant 0 : index
    %c0_34 = arith.constant 0 : index
    %40 = vector.load %arg11[%c0_32, %c0_33, %c0_34] : memref<2x1x64xf32, #tpu.memory_space<vmem>>, vector<1x1x64xf32>
    %41 = vector.shape_cast %40 : vector<1x1x64xf32> to vector<1x64xf32>
    %c0_35 = arith.constant 0 : index
    %c0_36 = arith.constant 0 : index
    %c0_37 = arith.constant 0 : index
    %42 = vector.load %arg12[%c0_35, %c0_36, %c0_37] : memref<2x64x32xbf16, #tpu.memory_space<vmem>>, vector<1x64x32xbf16>
    %43 = vector.shape_cast %42 : vector<1x64x32xbf16> to vector<64x32xbf16>
    %c0_38 = arith.constant 0 : index
    %c0_39 = arith.constant 0 : index
    %c0_40 = arith.constant 0 : index
    %44 = vector.load %arg13[%c0_38, %c0_39, %c0_40] : memref<2x1x32xf32, #tpu.memory_space<vmem>>, vector<1x1x32xf32>
    %45 = vector.shape_cast %44 : vector<1x1x32xf32> to vector<1x32xf32>
    %c0_41 = arith.constant 0 : index
    %c0_42 = arith.constant 0 : index
    %c0_43 = arith.constant 0 : index
    %46 = vector.load %arg14[%c0_41, %c0_42, %c0_43] : memref<2x1x32xf32, #tpu.memory_space<vmem>>, vector<1x1x32xf32>
    %47 = vector.shape_cast %46 : vector<1x1x32xf32> to vector<1x32xf32>
    %c0_44 = arith.constant 0 : index
    %c0_45 = arith.constant 0 : index
    %c0_46 = arith.constant 0 : index
    %48 = vector.load %arg15[%c0_44, %c0_45, %c0_46] : memref<2x1x32xf32, #tpu.memory_space<vmem>>, vector<1x1x32xf32>
    %49 = vector.shape_cast %48 : vector<1x1x32xf32> to vector<1x32xf32>
    %50 = arith.truncf %24 : vector<16x32xf32> to vector<16x32xbf16>
    %cst_47 = arith.constant dense<0.000000e+00> : vector<16x96xf32>
    %51 = tpu.matmul %50, %27, %cst_47 {dimension_numbers = #tpu.dot_dimension_numbers<[1], [0], [0], [1], [0, 0, 1, 1], [], []>} : vector<16x32xbf16>, vector<32x96xbf16>, vector<16x96xf32> -> vector<16x96xf32>
    %52 = vector.broadcast %29 : vector<1x96xf32> to vector<16x96xf32>
    %53 = arith.addf %51, %52 : vector<16x96xf32>
    %54 = vector.extract_strided_slice %53 {offsets = [0, 0], sizes = [16, 32], strides = [1, 1]} : vector<16x96xf32> to vector<16x32xf32>
    %55 = arith.truncf %54 : vector<16x32xf32> to vector<16x32xbf16>
    %56 = vector.extract_strided_slice %53 {offsets = [0, 32], sizes = [16, 32], strides = [1, 1]} : vector<16x96xf32> to vector<16x32xf32>
    %57 = arith.truncf %56 : vector<16x32xf32> to vector<16x32xbf16>
    %58 = vector.extract_strided_slice %53 {offsets = [0, 64], sizes = [16, 32], strides = [1, 1]} : vector<16x96xf32> to vector<16x32xf32>
    %59 = arith.truncf %58 : vector<16x32xf32> to vector<16x32xbf16>
    %60 = vector.extract_strided_slice %55 {offsets = [0, 0], sizes = [16, 8], strides = [1, 1]} : vector<16x32xbf16> to vector<16x8xbf16>
    %61 = vector.extract_strided_slice %57 {offsets = [0, 0], sizes = [16, 8], strides = [1, 1]} : vector<16x32xbf16> to vector<16x8xbf16>
    %62 = vector.extract_strided_slice %59 {offsets = [0, 0], sizes = [16, 8], strides = [1, 1]} : vector<16x32xbf16> to vector<16x8xbf16>
    %cst_48 = arith.constant dense<0.000000e+00> : vector<16x16xf32>
    %63 = tpu.matmul %60, %61, %cst_48 {dimension_numbers = #tpu.dot_dimension_numbers<[1], [1], [0], [0], [0, 0, 1, 0], [], []>} : vector<16x8xbf16>, vector<16x8xbf16>, vector<16x16xf32> -> vector<16x16xf32>
    %64 = arith.addf %63, %25 : vector<16x16xf32>
    %cst_49 = arith.constant dense<0xFF800000> : vector<16xf32>
    %65 = vector.multi_reduction <maximumf>, %64, %cst_49 [1] : vector<16x16xf32> to vector<16xf32>
    %66 = vector.shape_cast %65 : vector<16xf32> to vector<16x1xf32>
    %67 = vector.broadcast %66 : vector<16x1xf32> to vector<16x16xf32>
    %68 = arith.subf %64, %67 : vector<16x16xf32>
    %69 = math.exp %68 : vector<16x16xf32>
    %cst_50 = arith.constant dense<0.000000e+00> : vector<16xf32>
    %70 = vector.multi_reduction <add>, %69, %cst_50 [1] : vector<16x16xf32> to vector<16xf32>
    %71 = vector.shape_cast %70 : vector<16xf32> to vector<16x1xf32>
    %72 = tpu.reciprocal %71 {approx = true} : vector<16x1xf32> -> vector<16x1xf32>
    %73 = vector.broadcast %72 : vector<16x1xf32> to vector<16x16xf32>
    %74 = arith.mulf %69, %73 : vector<16x16xf32>
    %75 = arith.truncf %74 : vector<16x16xf32> to vector<16x16xbf16>
    %cst_51 = arith.constant dense<0.000000e+00> : vector<16x8xf32>
    %76 = tpu.matmul %75, %62, %cst_51 {dimension_numbers = #tpu.dot_dimension_numbers<[1], [0], [0], [1], [0, 0, 1, 1], [], []>} : vector<16x16xbf16>, vector<16x8xbf16>, vector<16x8xf32> -> vector<16x8xf32>
    %77 = arith.truncf %76 : vector<16x8xf32> to vector<16x8xbf16>
    %78 = vector.extract_strided_slice %31 {offsets = [0, 0], sizes = [8, 32], strides = [1, 1]} : vector<32x32xbf16> to vector<8x32xbf16>
    %cst_52 = arith.constant dense<0.000000e+00> : vector<16x32xf32>
    %79 = tpu.matmul %77, %78, %cst_52 {dimension_numbers = #tpu.dot_dimension_numbers<[1], [0], [0], [1], [0, 0, 1, 1], [], []>} : vector<16x8xbf16>, vector<8x32xbf16>, vector<16x32xf32> -> vector<16x32xf32>
    %80 = vector.extract_strided_slice %55 {offsets = [0, 8], sizes = [16, 8], strides = [1, 1]} : vector<16x32xbf16> to vector<16x8xbf16>
    %81 = vector.extract_strided_slice %57 {offsets = [0, 8], sizes = [16, 8], strides = [1, 1]} : vector<16x32xbf16> to vector<16x8xbf16>
    %82 = vector.extract_strided_slice %59 {offsets = [0, 8], sizes = [16, 8], strides = [1, 1]} : vector<16x32xbf16> to vector<16x8xbf16>
    %cst_53 = arith.constant dense<0.000000e+00> : vector<16x16xf32>
    %83 = tpu.matmul %80, %81, %cst_53 {dimension_numbers = #tpu.dot_dimension_numbers<[1], [1], [0], [0], [0, 0, 1, 0], [], []>} : vector<16x8xbf16>, vector<16x8xbf16>, vector<16x16xf32> -> vector<16x16xf32>
    %84 = arith.addf %83, %25 : vector<16x16xf32>
    %cst_54 = arith.constant dense<0xFF800000> : vector<16xf32>
    %85 = vector.multi_reduction <maximumf>, %84, %cst_54 [1] : vector<16x16xf32> to vector<16xf32>
    %86 = vector.shape_cast %85 : vector<16xf32> to vector<16x1xf32>
    %87 = vector.broadcast %86 : vector<16x1xf32> to vector<16x16xf32>
    %88 = arith.subf %84, %87 : vector<16x16xf32>
    %89 = math.exp %88 : vector<16x16xf32>
    %cst_55 = arith.constant dense<0.000000e+00> : vector<16xf32>
    %90 = vector.multi_reduction <add>, %89, %cst_55 [1] : vector<16x16xf32> to vector<16xf32>
    %91 = vector.shape_cast %90 : vector<16xf32> to vector<16x1xf32>
    %92 = tpu.reciprocal %91 {approx = true} : vector<16x1xf32> -> vector<16x1xf32>
    %93 = vector.broadcast %92 : vector<16x1xf32> to vector<16x16xf32>
    %94 = arith.mulf %89, %93 : vector<16x16xf32>
    %95 = arith.truncf %94 : vector<16x16xf32> to vector<16x16xbf16>
    %cst_56 = arith.constant dense<0.000000e+00> : vector<16x8xf32>
    %96 = tpu.matmul %95, %82, %cst_56 {dimension_numbers = #tpu.dot_dimension_numbers<[1], [0], [0], [1], [0, 0, 1, 1], [], []>} : vector<16x16xbf16>, vector<16x8xbf16>, vector<16x8xf32> -> vector<16x8xf32>
    %97 = arith.truncf %96 : vector<16x8xf32> to vector<16x8xbf16>
    %98 = vector.extract_strided_slice %31 {offsets = [8, 0], sizes = [8, 32], strides = [1, 1]} : vector<32x32xbf16> to vector<8x32xbf16>
    %cst_57 = arith.constant dense<0.000000e+00> : vector<16x32xf32>
    %99 = tpu.matmul %97, %98, %cst_57 {dimension_numbers = #tpu.dot_dimension_numbers<[1], [0], [0], [1], [0, 0, 1, 1], [], []>} : vector<16x8xbf16>, vector<8x32xbf16>, vector<16x32xf32> -> vector<16x32xf32>
    %100 = arith.addf %79, %99 : vector<16x32xf32>
    %101 = vector.extract_strided_slice %55 {offsets = [0, 16], sizes = [16, 8], strides = [1, 1]} : vector<16x32xbf16> to vector<16x8xbf16>
    %102 = vector.extract_strided_slice %57 {offsets = [0, 16], sizes = [16, 8], strides = [1, 1]} : vector<16x32xbf16> to vector<16x8xbf16>
    %103 = vector.extract_strided_slice %59 {offsets = [0, 16], sizes = [16, 8], strides = [1, 1]} : vector<16x32xbf16> to vector<16x8xbf16>
    %cst_58 = arith.constant dense<0.000000e+00> : vector<16x16xf32>
    %104 = tpu.matmul %101, %102, %cst_58 {dimension_numbers = #tpu.dot_dimension_numbers<[1], [1], [0], [0], [0, 0, 1, 0], [], []>} : vector<16x8xbf16>, vector<16x8xbf16>, vector<16x16xf32> -> vector<16x16xf32>
    %105 = arith.addf %104, %25 : vector<16x16xf32>
    %cst_59 = arith.constant dense<0xFF800000> : vector<16xf32>
    %106 = vector.multi_reduction <maximumf>, %105, %cst_59 [1] : vector<16x16xf32> to vector<16xf32>
    %107 = vector.shape_cast %106 : vector<16xf32> to vector<16x1xf32>
    %108 = vector.broadcast %107 : vector<16x1xf32> to vector<16x16xf32>
    %109 = arith.subf %105, %108 : vector<16x16xf32>
    %110 = math.exp %109 : vector<16x16xf32>
    %cst_60 = arith.constant dense<0.000000e+00> : vector<16xf32>
    %111 = vector.multi_reduction <add>, %110, %cst_60 [1] : vector<16x16xf32> to vector<16xf32>
    %112 = vector.shape_cast %111 : vector<16xf32> to vector<16x1xf32>
    %113 = tpu.reciprocal %112 {approx = true} : vector<16x1xf32> -> vector<16x1xf32>
    %114 = vector.broadcast %113 : vector<16x1xf32> to vector<16x16xf32>
    %115 = arith.mulf %110, %114 : vector<16x16xf32>
    %116 = arith.truncf %115 : vector<16x16xf32> to vector<16x16xbf16>
    %cst_61 = arith.constant dense<0.000000e+00> : vector<16x8xf32>
    %117 = tpu.matmul %116, %103, %cst_61 {dimension_numbers = #tpu.dot_dimension_numbers<[1], [0], [0], [1], [0, 0, 1, 1], [], []>} : vector<16x16xbf16>, vector<16x8xbf16>, vector<16x8xf32> -> vector<16x8xf32>
    %118 = arith.truncf %117 : vector<16x8xf32> to vector<16x8xbf16>
    %119 = vector.extract_strided_slice %31 {offsets = [16, 0], sizes = [8, 32], strides = [1, 1]} : vector<32x32xbf16> to vector<8x32xbf16>
    %cst_62 = arith.constant dense<0.000000e+00> : vector<16x32xf32>
    %120 = tpu.matmul %118, %119, %cst_62 {dimension_numbers = #tpu.dot_dimension_numbers<[1], [0], [0], [1], [0, 0, 1, 1], [], []>} : vector<16x8xbf16>, vector<8x32xbf16>, vector<16x32xf32> -> vector<16x32xf32>
    %121 = arith.addf %100, %120 : vector<16x32xf32>
    %122 = vector.extract_strided_slice %55 {offsets = [0, 24], sizes = [16, 8], strides = [1, 1]} : vector<16x32xbf16> to vector<16x8xbf16>
    %123 = vector.extract_strided_slice %57 {offsets = [0, 24], sizes = [16, 8], strides = [1, 1]} : vector<16x32xbf16> to vector<16x8xbf16>
    %124 = vector.extract_strided_slice %59 {offsets = [0, 24], sizes = [16, 8], strides = [1, 1]} : vector<16x32xbf16> to vector<16x8xbf16>
    %cst_63 = arith.constant dense<0.000000e+00> : vector<16x16xf32>
    %125 = tpu.matmul %122, %123, %cst_63 {dimension_numbers = #tpu.dot_dimension_numbers<[1], [1], [0], [0], [0, 0, 1, 0], [], []>} : vector<16x8xbf16>, vector<16x8xbf16>, vector<16x16xf32> -> vector<16x16xf32>
    %126 = arith.addf %125, %25 : vector<16x16xf32>
    %cst_64 = arith.constant dense<0xFF800000> : vector<16xf32>
    %127 = vector.multi_reduction <maximumf>, %126, %cst_64 [1] : vector<16x16xf32> to vector<16xf32>
    %128 = vector.shape_cast %127 : vector<16xf32> to vector<16x1xf32>
    %129 = vector.broadcast %128 : vector<16x1xf32> to vector<16x16xf32>
    %130 = arith.subf %126, %129 : vector<16x16xf32>
    %131 = math.exp %130 : vector<16x16xf32>
    %cst_65 = arith.constant dense<0.000000e+00> : vector<16xf32>
    %132 = vector.multi_reduction <add>, %131, %cst_65 [1] : vector<16x16xf32> to vector<16xf32>
    %133 = vector.shape_cast %132 : vector<16xf32> to vector<16x1xf32>
    %134 = tpu.reciprocal %133 {approx = true} : vector<16x1xf32> -> vector<16x1xf32>
    %135 = vector.broadcast %134 : vector<16x1xf32> to vector<16x16xf32>
    %136 = arith.mulf %131, %135 : vector<16x16xf32>
    %137 = arith.truncf %136 : vector<16x16xf32> to vector<16x16xbf16>
    %cst_66 = arith.constant dense<0.000000e+00> : vector<16x8xf32>
    %138 = tpu.matmul %137, %124, %cst_66 {dimension_numbers = #tpu.dot_dimension_numbers<[1], [0], [0], [1], [0, 0, 1, 1], [], []>} : vector<16x16xbf16>, vector<16x8xbf16>, vector<16x8xf32> -> vector<16x8xf32>
    %139 = arith.truncf %138 : vector<16x8xf32> to vector<16x8xbf16>
    %140 = vector.extract_strided_slice %31 {offsets = [24, 0], sizes = [8, 32], strides = [1, 1]} : vector<32x32xbf16> to vector<8x32xbf16>
    %cst_67 = arith.constant dense<0.000000e+00> : vector<16x32xf32>
    %141 = tpu.matmul %139, %140, %cst_67 {dimension_numbers = #tpu.dot_dimension_numbers<[1], [0], [0], [1], [0, 0, 1, 1], [], []>} : vector<16x8xbf16>, vector<8x32xbf16>, vector<16x32xf32> -> vector<16x32xf32>
    %142 = arith.addf %121, %141 : vector<16x32xf32>
    %143 = vector.broadcast %33 : vector<1x32xf32> to vector<16x32xf32>
    %144 = arith.addf %142, %143 : vector<16x32xf32>
    %145 = arith.addf %144, %24 : vector<16x32xf32>
    %cst_68 = arith.constant dense<0.000000e+00> : vector<16xf32>
    %146 = vector.multi_reduction <add>, %145, %cst_68 [1] : vector<16x32xf32> to vector<16xf32>
    %147 = vector.shape_cast %146 : vector<16xf32> to vector<16x1xf32>
    %cst_69 = arith.constant 3.200000e+01 : f32
    %148 = vector.broadcast %cst_69 : f32 to vector<16x1xf32>
    %149 = arith.divf %147, %148 : vector<16x1xf32>
    %150 = vector.broadcast %149 : vector<16x1xf32> to vector<16x32xf32>
    %151 = arith.subf %145, %150 : vector<16x32xf32>
    %152 = arith.mulf %151, %151 : vector<16x32xf32>
    %cst_70 = arith.constant dense<0.000000e+00> : vector<16xf32>
    %153 = vector.multi_reduction <add>, %152, %cst_70 [1] : vector<16x32xf32> to vector<16xf32>
    %154 = vector.shape_cast %153 : vector<16xf32> to vector<16x1xf32>
    %cst_71 = arith.constant 3.200000e+01 : f32
    %155 = vector.broadcast %cst_71 : f32 to vector<16x1xf32>
    %156 = arith.divf %154, %155 : vector<16x1xf32>
    %157 = vector.broadcast %149 : vector<16x1xf32> to vector<16x32xf32>
    %158 = arith.subf %145, %157 : vector<16x32xf32>
    %cst_72 = arith.constant 9.99999996E-13 : f32
    %159 = vector.broadcast %cst_72 : f32 to vector<16x1xf32>
    %160 = arith.addf %156, %159 : vector<16x1xf32>
    %161 = math.rsqrt %160 : vector<16x1xf32>
    %162 = vector.broadcast %161 : vector<16x1xf32> to vector<16x32xf32>
    %163 = arith.mulf %158, %162 : vector<16x32xf32>
    %164 = vector.broadcast %35 : vector<1x32xf32> to vector<16x32xf32>
    %165 = arith.mulf %163, %164 : vector<16x32xf32>
    %166 = vector.broadcast %37 : vector<1x32xf32> to vector<16x32xf32>
    %167 = arith.addf %165, %166 : vector<16x32xf32>
    %168 = arith.truncf %167 : vector<16x32xf32> to vector<16x32xbf16>
    %cst_73 = arith.constant dense<0.000000e+00> : vector<16x64xf32>
    %169 = tpu.matmul %168, %39, %cst_73 {dimension_numbers = #tpu.dot_dimension_numbers<[1], [0], [0], [1], [0, 0, 1, 1], [], []>} : vector<16x32xbf16>, vector<32x64xbf16>, vector<16x64xf32> -> vector<16x64xf32>
    %170 = vector.broadcast %41 : vector<1x64xf32> to vector<16x64xf32>
    %171 = arith.addf %169, %170 : vector<16x64xf32>
    %cst_74 = arith.constant 5.000000e-01 : f32
    %172 = vector.broadcast %cst_74 : f32 to vector<16x64xf32>
    %173 = arith.mulf %172, %171 : vector<16x64xf32>
    %cst_75 = arith.constant 0.707106769 : f32
    %174 = vector.broadcast %cst_75 : f32 to vector<16x64xf32>
    %175 = arith.mulf %171, %174 : vector<16x64xf32>
    %cst_76 = arith.constant 0.000000e+00 : f32
    %176 = vector.broadcast %cst_76 : f32 to vector<16x64xf32>
    %177 = arith.cmpf oge, %175, %176 : vector<16x64xf32>
    %cst_77 = arith.constant 1.000000e+00 : f32
    %cst_78 = arith.constant -1.000000e+00 : f32
    %178 = vector.broadcast %cst_77 : f32 to vector<16x64xf32>
    %179 = vector.broadcast %cst_78 : f32 to vector<16x64xf32>
    %180 = arith.select %177, %178, %179 : vector<16x64xi1>, vector<16x64xf32>
    %181 = math.absf %175 : vector<16x64xf32>
    %cst_79 = arith.constant 0.327591091 : f32
    %182 = vector.broadcast %cst_79 : f32 to vector<16x64xf32>
    %183 = arith.mulf %182, %181 : vector<16x64xf32>
    %cst_80 = arith.constant 1.000000e+00 : f32
    %184 = vector.broadcast %cst_80 : f32 to vector<16x64xf32>
    %185 = arith.addf %184, %183 : vector<16x64xf32>
    %186 = tpu.reciprocal %185 {approx = true} : vector<16x64xf32> -> vector<16x64xf32>
    %cst_81 = arith.constant 1.06140542 : f32
    %187 = vector.broadcast %cst_81 : f32 to vector<16x64xf32>
    %188 = arith.mulf %187, %186 : vector<16x64xf32>
    %cst_82 = arith.constant -1.45315206 : f32
    %189 = vector.broadcast %cst_82 : f32 to vector<16x64xf32>
    %190 = arith.addf %188, %189 : vector<16x64xf32>
    %191 = arith.mulf %190, %186 : vector<16x64xf32>
    %cst_83 = arith.constant 1.42141378 : f32
    %192 = vector.broadcast %cst_83 : f32 to vector<16x64xf32>
    %193 = arith.addf %191, %192 : vector<16x64xf32>
    %194 = arith.mulf %193, %186 : vector<16x64xf32>
    %cst_84 = arith.constant -0.284496725 : f32
    %195 = vector.broadcast %cst_84 : f32 to vector<16x64xf32>
    %196 = arith.addf %194, %195 : vector<16x64xf32>
    %197 = arith.mulf %196, %186 : vector<16x64xf32>
    %cst_85 = arith.constant 0.254829586 : f32
    %198 = vector.broadcast %cst_85 : f32 to vector<16x64xf32>
    %199 = arith.addf %197, %198 : vector<16x64xf32>
    %200 = arith.mulf %199, %186 : vector<16x64xf32>
    %cst_86 = arith.constant 0.000000e+00 : f32
    %201 = vector.broadcast %cst_86 : f32 to vector<16x64xf32>
    %202 = arith.subf %201, %181 : vector<16x64xf32>
    %203 = arith.mulf %202, %181 : vector<16x64xf32>
    %204 = math.exp %203 : vector<16x64xf32>
    %205 = arith.mulf %200, %204 : vector<16x64xf32>
    %cst_87 = arith.constant 1.000000e+00 : f32
    %206 = vector.broadcast %cst_87 : f32 to vector<16x64xf32>
    %207 = arith.subf %206, %205 : vector<16x64xf32>
    %208 = arith.mulf %180, %207 : vector<16x64xf32>
    %cst_88 = arith.constant 1.000000e+00 : f32
    %209 = vector.broadcast %cst_88 : f32 to vector<16x64xf32>
    %210 = arith.addf %209, %208 : vector<16x64xf32>
    %211 = arith.mulf %173, %210 : vector<16x64xf32>
    %212 = arith.truncf %211 : vector<16x64xf32> to vector<16x64xbf16>
    %cst_89 = arith.constant dense<0.000000e+00> : vector<16x32xf32>
    %213 = tpu.matmul %212, %43, %cst_89 {dimension_numbers = #tpu.dot_dimension_numbers<[1], [0], [0], [1], [0, 0, 1, 1], [], []>} : vector<16x64xbf16>, vector<64x32xbf16>, vector<16x32xf32> -> vector<16x32xf32>
    %214 = vector.broadcast %45 : vector<1x32xf32> to vector<16x32xf32>
    %215 = arith.addf %213, %214 : vector<16x32xf32>
    %216 = arith.addf %215, %167 : vector<16x32xf32>
    %cst_90 = arith.constant dense<0.000000e+00> : vector<16xf32>
    %217 = vector.multi_reduction <add>, %216, %cst_90 [1] : vector<16x32xf32> to vector<16xf32>
    %218 = vector.shape_cast %217 : vector<16xf32> to vector<16x1xf32>
    %cst_91 = arith.constant 3.200000e+01 : f32
    %219 = vector.broadcast %cst_91 : f32 to vector<16x1xf32>
    %220 = arith.divf %218, %219 : vector<16x1xf32>
    %221 = vector.broadcast %220 : vector<16x1xf32> to vector<16x32xf32>
    %222 = arith.subf %216, %221 : vector<16x32xf32>
    %223 = arith.mulf %222, %222 : vector<16x32xf32>
    %cst_92 = arith.constant dense<0.000000e+00> : vector<16xf32>
    %224 = vector.multi_reduction <add>, %223, %cst_92 [1] : vector<16x32xf32> to vector<16xf32>
    %225 = vector.shape_cast %224 : vector<16xf32> to vector<16x1xf32>
    %cst_93 = arith.constant 3.200000e+01 : f32
    %226 = vector.broadcast %cst_93 : f32 to vector<16x1xf32>
    %227 = arith.divf %225, %226 : vector<16x1xf32>
    %228 = vector.broadcast %220 : vector<16x1xf32> to vector<16x32xf32>
    %229 = arith.subf %216, %228 : vector<16x32xf32>
    %cst_94 = arith.constant 9.99999996E-13 : f32
    %230 = vector.broadcast %cst_94 : f32 to vector<16x1xf32>
    %231 = arith.addf %227, %230 : vector<16x1xf32>
    %232 = math.rsqrt %231 : vector<16x1xf32>
    %233 = vector.broadcast %232 : vector<16x1xf32> to vector<16x32xf32>
    %234 = arith.mulf %229, %233 : vector<16x32xf32>
    %235 = vector.broadcast %47 : vector<1x32xf32> to vector<16x32xf32>
    %236 = arith.mulf %234, %235 : vector<16x32xf32>
    %237 = vector.broadcast %49 : vector<1x32xf32> to vector<16x32xf32>
    %238 = arith.addf %236, %237 : vector<16x32xf32>
    %c1 = arith.constant 1 : index
    %c0_95 = arith.constant 0 : index
    %c0_96 = arith.constant 0 : index
    %239 = vector.load %arg4[%c1, %c0_95, %c0_96] : memref<2x32x96xbf16, #tpu.memory_space<vmem>>, vector<1x32x96xbf16>
    %240 = vector.shape_cast %239 : vector<1x32x96xbf16> to vector<32x96xbf16>
    %c1_97 = arith.constant 1 : index
    %c0_98 = arith.constant 0 : index
    %c0_99 = arith.constant 0 : index
    %241 = vector.load %arg5[%c1_97, %c0_98, %c0_99] : memref<2x1x96xf32, #tpu.memory_space<vmem>>, vector<1x1x96xf32>
    %242 = vector.shape_cast %241 : vector<1x1x96xf32> to vector<1x96xf32>
    %c1_100 = arith.constant 1 : index
    %c0_101 = arith.constant 0 : index
    %c0_102 = arith.constant 0 : index
    %243 = vector.load %arg6[%c1_100, %c0_101, %c0_102] : memref<2x32x32xbf16, #tpu.memory_space<vmem>>, vector<1x32x32xbf16>
    %244 = vector.shape_cast %243 : vector<1x32x32xbf16> to vector<32x32xbf16>
    %c1_103 = arith.constant 1 : index
    %c0_104 = arith.constant 0 : index
    %c0_105 = arith.constant 0 : index
    %245 = vector.load %arg7[%c1_103, %c0_104, %c0_105] : memref<2x1x32xf32, #tpu.memory_space<vmem>>, vector<1x1x32xf32>
    %246 = vector.shape_cast %245 : vector<1x1x32xf32> to vector<1x32xf32>
    %c1_106 = arith.constant 1 : index
    %c0_107 = arith.constant 0 : index
    %c0_108 = arith.constant 0 : index
    %247 = vector.load %arg8[%c1_106, %c0_107, %c0_108] : memref<2x1x32xf32, #tpu.memory_space<vmem>>, vector<1x1x32xf32>
    %248 = vector.shape_cast %247 : vector<1x1x32xf32> to vector<1x32xf32>
    %c1_109 = arith.constant 1 : index
    %c0_110 = arith.constant 0 : index
    %c0_111 = arith.constant 0 : index
    %249 = vector.load %arg9[%c1_109, %c0_110, %c0_111] : memref<2x1x32xf32, #tpu.memory_space<vmem>>, vector<1x1x32xf32>
    %250 = vector.shape_cast %249 : vector<1x1x32xf32> to vector<1x32xf32>
    %c1_112 = arith.constant 1 : index
    %c0_113 = arith.constant 0 : index
    %c0_114 = arith.constant 0 : index
    %251 = vector.load %arg10[%c1_112, %c0_113, %c0_114] : memref<2x32x64xbf16, #tpu.memory_space<vmem>>, vector<1x32x64xbf16>
    %252 = vector.shape_cast %251 : vector<1x32x64xbf16> to vector<32x64xbf16>
    %c1_115 = arith.constant 1 : index
    %c0_116 = arith.constant 0 : index
    %c0_117 = arith.constant 0 : index
    %253 = vector.load %arg11[%c1_115, %c0_116, %c0_117] : memref<2x1x64xf32, #tpu.memory_space<vmem>>, vector<1x1x64xf32>
    %254 = vector.shape_cast %253 : vector<1x1x64xf32> to vector<1x64xf32>
    %c1_118 = arith.constant 1 : index
    %c0_119 = arith.constant 0 : index
    %c0_120 = arith.constant 0 : index
    %255 = vector.load %arg12[%c1_118, %c0_119, %c0_120] : memref<2x64x32xbf16, #tpu.memory_space<vmem>>, vector<1x64x32xbf16>
    %256 = vector.shape_cast %255 : vector<1x64x32xbf16> to vector<64x32xbf16>
    %c1_121 = arith.constant 1 : index
    %c0_122 = arith.constant 0 : index
    %c0_123 = arith.constant 0 : index
    %257 = vector.load %arg13[%c1_121, %c0_122, %c0_123] : memref<2x1x32xf32, #tpu.memory_space<vmem>>, vector<1x1x32xf32>
    %258 = vector.shape_cast %257 : vector<1x1x32xf32> to vector<1x32xf32>
    %c1_124 = arith.constant 1 : index
    %c0_125 = arith.constant 0 : index
    %c0_126 = arith.constant 0 : index
    %259 = vector.load %arg14[%c1_124, %c0_125, %c0_126] : memref<2x1x32xf32, #tpu.memory_space<vmem>>, vector<1x1x32xf32>
    %260 = vector.shape_cast %259 : vector<1x1x32xf32> to vector<1x32xf32>
    %c1_127 = arith.constant 1 : index
    %c0_128 = arith.constant 0 : index
    %c0_129 = arith.constant 0 : index
    %261 = vector.load %arg15[%c1_127, %c0_128, %c0_129] : memref<2x1x32xf32, #tpu.memory_space<vmem>>, vector<1x1x32xf32>
    %262 = vector.shape_cast %261 : vector<1x1x32xf32> to vector<1x32xf32>
    %263 = arith.truncf %238 : vector<16x32xf32> to vector<16x32xbf16>
    %cst_130 = arith.constant dense<0.000000e+00> : vector<16x96xf32>
    %264 = tpu.matmul %263, %240, %cst_130 {dimension_numbers = #tpu.dot_dimension_numbers<[1], [0], [0], [1], [0, 0, 1, 1], [], []>} : vector<16x32xbf16>, vector<32x96xbf16>, vector<16x96xf32> -> vector<16x96xf32>
    %265 = vector.broadcast %242 : vector<1x96xf32> to vector<16x96xf32>
    %266 = arith.addf %264, %265 : vector<16x96xf32>
    %267 = vector.extract_strided_slice %266 {offsets = [0, 0], sizes = [16, 32], strides = [1, 1]} : vector<16x96xf32> to vector<16x32xf32>
    %268 = arith.truncf %267 : vector<16x32xf32> to vector<16x32xbf16>
    %269 = vector.extract_strided_slice %266 {offsets = [0, 32], sizes = [16, 32], strides = [1, 1]} : vector<16x96xf32> to vector<16x32xf32>
    %270 = arith.truncf %269 : vector<16x32xf32> to vector<16x32xbf16>
    %271 = vector.extract_strided_slice %266 {offsets = [0, 64], sizes = [16, 32], strides = [1, 1]} : vector<16x96xf32> to vector<16x32xf32>
    %272 = arith.truncf %271 : vector<16x32xf32> to vector<16x32xbf16>
    %273 = vector.extract_strided_slice %268 {offsets = [0, 0], sizes = [16, 8], strides = [1, 1]} : vector<16x32xbf16> to vector<16x8xbf16>
    %274 = vector.extract_strided_slice %270 {offsets = [0, 0], sizes = [16, 8], strides = [1, 1]} : vector<16x32xbf16> to vector<16x8xbf16>
    %275 = vector.extract_strided_slice %272 {offsets = [0, 0], sizes = [16, 8], strides = [1, 1]} : vector<16x32xbf16> to vector<16x8xbf16>
    %cst_131 = arith.constant dense<0.000000e+00> : vector<16x16xf32>
    %276 = tpu.matmul %273, %274, %cst_131 {dimension_numbers = #tpu.dot_dimension_numbers<[1], [1], [0], [0], [0, 0, 1, 0], [], []>} : vector<16x8xbf16>, vector<16x8xbf16>, vector<16x16xf32> -> vector<16x16xf32>
    %277 = arith.addf %276, %25 : vector<16x16xf32>
    %cst_132 = arith.constant dense<0xFF800000> : vector<16xf32>
    %278 = vector.multi_reduction <maximumf>, %277, %cst_132 [1] : vector<16x16xf32> to vector<16xf32>
    %279 = vector.shape_cast %278 : vector<16xf32> to vector<16x1xf32>
    %280 = vector.broadcast %279 : vector<16x1xf32> to vector<16x16xf32>
    %281 = arith.subf %277, %280 : vector<16x16xf32>
    %282 = math.exp %281 : vector<16x16xf32>
    %cst_133 = arith.constant dense<0.000000e+00> : vector<16xf32>
    %283 = vector.multi_reduction <add>, %282, %cst_133 [1] : vector<16x16xf32> to vector<16xf32>
    %284 = vector.shape_cast %283 : vector<16xf32> to vector<16x1xf32>
    %285 = tpu.reciprocal %284 {approx = true} : vector<16x1xf32> -> vector<16x1xf32>
    %286 = vector.broadcast %285 : vector<16x1xf32> to vector<16x16xf32>
    %287 = arith.mulf %282, %286 : vector<16x16xf32>
    %288 = arith.truncf %287 : vector<16x16xf32> to vector<16x16xbf16>
    %cst_134 = arith.constant dense<0.000000e+00> : vector<16x8xf32>
    %289 = tpu.matmul %288, %275, %cst_134 {dimension_numbers = #tpu.dot_dimension_numbers<[1], [0], [0], [1], [0, 0, 1, 1], [], []>} : vector<16x16xbf16>, vector<16x8xbf16>, vector<16x8xf32> -> vector<16x8xf32>
    %290 = arith.truncf %289 : vector<16x8xf32> to vector<16x8xbf16>
    %291 = vector.extract_strided_slice %244 {offsets = [0, 0], sizes = [8, 32], strides = [1, 1]} : vector<32x32xbf16> to vector<8x32xbf16>
    %cst_135 = arith.constant dense<0.000000e+00> : vector<16x32xf32>
    %292 = tpu.matmul %290, %291, %cst_135 {dimension_numbers = #tpu.dot_dimension_numbers<[1], [0], [0], [1], [0, 0, 1, 1], [], []>} : vector<16x8xbf16>, vector<8x32xbf16>, vector<16x32xf32> -> vector<16x32xf32>
    %293 = vector.extract_strided_slice %268 {offsets = [0, 8], sizes = [16, 8], strides = [1, 1]} : vector<16x32xbf16> to vector<16x8xbf16>
    %294 = vector.extract_strided_slice %270 {offsets = [0, 8], sizes = [16, 8], strides = [1, 1]} : vector<16x32xbf16> to vector<16x8xbf16>
    %295 = vector.extract_strided_slice %272 {offsets = [0, 8], sizes = [16, 8], strides = [1, 1]} : vector<16x32xbf16> to vector<16x8xbf16>
    %cst_136 = arith.constant dense<0.000000e+00> : vector<16x16xf32>
    %296 = tpu.matmul %293, %294, %cst_136 {dimension_numbers = #tpu.dot_dimension_numbers<[1], [1], [0], [0], [0, 0, 1, 0], [], []>} : vector<16x8xbf16>, vector<16x8xbf16>, vector<16x16xf32> -> vector<16x16xf32>
    %297 = arith.addf %296, %25 : vector<16x16xf32>
    %cst_137 = arith.constant dense<0xFF800000> : vector<16xf32>
    %298 = vector.multi_reduction <maximumf>, %297, %cst_137 [1] : vector<16x16xf32> to vector<16xf32>
    %299 = vector.shape_cast %298 : vector<16xf32> to vector<16x1xf32>
    %300 = vector.broadcast %299 : vector<16x1xf32> to vector<16x16xf32>
    %301 = arith.subf %297, %300 : vector<16x16xf32>
    %302 = math.exp %301 : vector<16x16xf32>
    %cst_138 = arith.constant dense<0.000000e+00> : vector<16xf32>
    %303 = vector.multi_reduction <add>, %302, %cst_138 [1] : vector<16x16xf32> to vector<16xf32>
    %304 = vector.shape_cast %303 : vector<16xf32> to vector<16x1xf32>
    %305 = tpu.reciprocal %304 {approx = true} : vector<16x1xf32> -> vector<16x1xf32>
    %306 = vector.broadcast %305 : vector<16x1xf32> to vector<16x16xf32>
    %307 = arith.mulf %302, %306 : vector<16x16xf32>
    %308 = arith.truncf %307 : vector<16x16xf32> to vector<16x16xbf16>
    %cst_139 = arith.constant dense<0.000000e+00> : vector<16x8xf32>
    %309 = tpu.matmul %308, %295, %cst_139 {dimension_numbers = #tpu.dot_dimension_numbers<[1], [0], [0], [1], [0, 0, 1, 1], [], []>} : vector<16x16xbf16>, vector<16x8xbf16>, vector<16x8xf32> -> vector<16x8xf32>
    %310 = arith.truncf %309 : vector<16x8xf32> to vector<16x8xbf16>
    %311 = vector.extract_strided_slice %244 {offsets = [8, 0], sizes = [8, 32], strides = [1, 1]} : vector<32x32xbf16> to vector<8x32xbf16>
    %cst_140 = arith.constant dense<0.000000e+00> : vector<16x32xf32>
    %312 = tpu.matmul %310, %311, %cst_140 {dimension_numbers = #tpu.dot_dimension_numbers<[1], [0], [0], [1], [0, 0, 1, 1], [], []>} : vector<16x8xbf16>, vector<8x32xbf16>, vector<16x32xf32> -> vector<16x32xf32>
    %313 = arith.addf %292, %312 : vector<16x32xf32>
    %314 = vector.extract_strided_slice %268 {offsets = [0, 16], sizes = [16, 8], strides = [1, 1]} : vector<16x32xbf16> to vector<16x8xbf16>
    %315 = vector.extract_strided_slice %270 {offsets = [0, 16], sizes = [16, 8], strides = [1, 1]} : vector<16x32xbf16> to vector<16x8xbf16>
    %316 = vector.extract_strided_slice %272 {offsets = [0, 16], sizes = [16, 8], strides = [1, 1]} : vector<16x32xbf16> to vector<16x8xbf16>
    %cst_141 = arith.constant dense<0.000000e+00> : vector<16x16xf32>
    %317 = tpu.matmul %314, %315, %cst_141 {dimension_numbers = #tpu.dot_dimension_numbers<[1], [1], [0], [0], [0, 0, 1, 0], [], []>} : vector<16x8xbf16>, vector<16x8xbf16>, vector<16x16xf32> -> vector<16x16xf32>
    %318 = arith.addf %317, %25 : vector<16x16xf32>
    %cst_142 = arith.constant dense<0xFF800000> : vector<16xf32>
    %319 = vector.multi_reduction <maximumf>, %318, %cst_142 [1] : vector<16x16xf32> to vector<16xf32>
    %320 = vector.shape_cast %319 : vector<16xf32> to vector<16x1xf32>
    %321 = vector.broadcast %320 : vector<16x1xf32> to vector<16x16xf32>
    %322 = arith.subf %318, %321 : vector<16x16xf32>
    %323 = math.exp %322 : vector<16x16xf32>
    %cst_143 = arith.constant dense<0.000000e+00> : vector<16xf32>
    %324 = vector.multi_reduction <add>, %323, %cst_143 [1] : vector<16x16xf32> to vector<16xf32>
    %325 = vector.shape_cast %324 : vector<16xf32> to vector<16x1xf32>
    %326 = tpu.reciprocal %325 {approx = true} : vector<16x1xf32> -> vector<16x1xf32>
    %327 = vector.broadcast %326 : vector<16x1xf32> to vector<16x16xf32>
    %328 = arith.mulf %323, %327 : vector<16x16xf32>
    %329 = arith.truncf %328 : vector<16x16xf32> to vector<16x16xbf16>
    %cst_144 = arith.constant dense<0.000000e+00> : vector<16x8xf32>
    %330 = tpu.matmul %329, %316, %cst_144 {dimension_numbers = #tpu.dot_dimension_numbers<[1], [0], [0], [1], [0, 0, 1, 1], [], []>} : vector<16x16xbf16>, vector<16x8xbf16>, vector<16x8xf32> -> vector<16x8xf32>
    %331 = arith.truncf %330 : vector<16x8xf32> to vector<16x8xbf16>
    %332 = vector.extract_strided_slice %244 {offsets = [16, 0], sizes = [8, 32], strides = [1, 1]} : vector<32x32xbf16> to vector<8x32xbf16>
    %cst_145 = arith.constant dense<0.000000e+00> : vector<16x32xf32>
    %333 = tpu.matmul %331, %332, %cst_145 {dimension_numbers = #tpu.dot_dimension_numbers<[1], [0], [0], [1], [0, 0, 1, 1], [], []>} : vector<16x8xbf16>, vector<8x32xbf16>, vector<16x32xf32> -> vector<16x32xf32>
    %334 = arith.addf %313, %333 : vector<16x32xf32>
    %335 = vector.extract_strided_slice %268 {offsets = [0, 24], sizes = [16, 8], strides = [1, 1]} : vector<16x32xbf16> to vector<16x8xbf16>
    %336 = vector.extract_strided_slice %270 {offsets = [0, 24], sizes = [16, 8], strides = [1, 1]} : vector<16x32xbf16> to vector<16x8xbf16>
    %337 = vector.extract_strided_slice %272 {offsets = [0, 24], sizes = [16, 8], strides = [1, 1]} : vector<16x32xbf16> to vector<16x8xbf16>
    %cst_146 = arith.constant dense<0.000000e+00> : vector<16x16xf32>
    %338 = tpu.matmul %335, %336, %cst_146 {dimension_numbers = #tpu.dot_dimension_numbers<[1], [1], [0], [0], [0, 0, 1, 0], [], []>} : vector<16x8xbf16>, vector<16x8xbf16>, vector<16x16xf32> -> vector<16x16xf32>
    %339 = arith.addf %338, %25 : vector<16x16xf32>
    %cst_147 = arith.constant dense<0xFF800000> : vector<16xf32>
    %340 = vector.multi_reduction <maximumf>, %339, %cst_147 [1] : vector<16x16xf32> to vector<16xf32>
    %341 = vector.shape_cast %340 : vector<16xf32> to vector<16x1xf32>
    %342 = vector.broadcast %341 : vector<16x1xf32> to vector<16x16xf32>
    %343 = arith.subf %339, %342 : vector<16x16xf32>
    %344 = math.exp %343 : vector<16x16xf32>
    %cst_148 = arith.constant dense<0.000000e+00> : vector<16xf32>
    %345 = vector.multi_reduction <add>, %344, %cst_148 [1] : vector<16x16xf32> to vector<16xf32>
    %346 = vector.shape_cast %345 : vector<16xf32> to vector<16x1xf32>
    %347 = tpu.reciprocal %346 {approx = true} : vector<16x1xf32> -> vector<16x1xf32>
    %348 = vector.broadcast %347 : vector<16x1xf32> to vector<16x16xf32>
    %349 = arith.mulf %344, %348 : vector<16x16xf32>
    %350 = arith.truncf %349 : vector<16x16xf32> to vector<16x16xbf16>
    %cst_149 = arith.constant dense<0.000000e+00> : vector<16x8xf32>
    %351 = tpu.matmul %350, %337, %cst_149 {dimension_numbers = #tpu.dot_dimension_numbers<[1], [0], [0], [1], [0, 0, 1, 1], [], []>} : vector<16x16xbf16>, vector<16x8xbf16>, vector<16x8xf32> -> vector<16x8xf32>
    %352 = arith.truncf %351 : vector<16x8xf32> to vector<16x8xbf16>
    %353 = vector.extract_strided_slice %244 {offsets = [24, 0], sizes = [8, 32], strides = [1, 1]} : vector<32x32xbf16> to vector<8x32xbf16>
    %cst_150 = arith.constant dense<0.000000e+00> : vector<16x32xf32>
    %354 = tpu.matmul %352, %353, %cst_150 {dimension_numbers = #tpu.dot_dimension_numbers<[1], [0], [0], [1], [0, 0, 1, 1], [], []>} : vector<16x8xbf16>, vector<8x32xbf16>, vector<16x32xf32> -> vector<16x32xf32>
    %355 = arith.addf %334, %354 : vector<16x32xf32>
    %356 = vector.broadcast %246 : vector<1x32xf32> to vector<16x32xf32>
    %357 = arith.addf %355, %356 : vector<16x32xf32>
    %358 = arith.addf %357, %238 : vector<16x32xf32>
    %cst_151 = arith.constant dense<0.000000e+00> : vector<16xf32>
    %359 = vector.multi_reduction <add>, %358, %cst_151 [1] : vector<16x32xf32> to vector<16xf32>
    %360 = vector.shape_cast %359 : vector<16xf32> to vector<16x1xf32>
    %cst_152 = arith.constant 3.200000e+01 : f32
    %361 = vector.broadcast %cst_152 : f32 to vector<16x1xf32>
    %362 = arith.divf %360, %361 : vector<16x1xf32>
    %363 = vector.broadcast %362 : vector<16x1xf32> to vector<16x32xf32>
    %364 = arith.subf %358, %363 : vector<16x32xf32>
    %365 = arith.mulf %364, %364 : vector<16x32xf32>
    %cst_153 = arith.constant dense<0.000000e+00> : vector<16xf32>
    %366 = vector.multi_reduction <add>, %365, %cst_153 [1] : vector<16x32xf32> to vector<16xf32>
    %367 = vector.shape_cast %366 : vector<16xf32> to vector<16x1xf32>
    %cst_154 = arith.constant 3.200000e+01 : f32
    %368 = vector.broadcast %cst_154 : f32 to vector<16x1xf32>
    %369 = arith.divf %367, %368 : vector<16x1xf32>
    %370 = vector.broadcast %362 : vector<16x1xf32> to vector<16x32xf32>
    %371 = arith.subf %358, %370 : vector<16x32xf32>
    %cst_155 = arith.constant 9.99999996E-13 : f32
    %372 = vector.broadcast %cst_155 : f32 to vector<16x1xf32>
    %373 = arith.addf %369, %372 : vector<16x1xf32>
    %374 = math.rsqrt %373 : vector<16x1xf32>
    %375 = vector.broadcast %374 : vector<16x1xf32> to vector<16x32xf32>
    %376 = arith.mulf %371, %375 : vector<16x32xf32>
    %377 = vector.broadcast %248 : vector<1x32xf32> to vector<16x32xf32>
    %378 = arith.mulf %376, %377 : vector<16x32xf32>
    %379 = vector.broadcast %250 : vector<1x32xf32> to vector<16x32xf32>
    %380 = arith.addf %378, %379 : vector<16x32xf32>
    %381 = arith.truncf %380 : vector<16x32xf32> to vector<16x32xbf16>
    %cst_156 = arith.constant dense<0.000000e+00> : vector<16x64xf32>
    %382 = tpu.matmul %381, %252, %cst_156 {dimension_numbers = #tpu.dot_dimension_numbers<[1], [0], [0], [1], [0, 0, 1, 1], [], []>} : vector<16x32xbf16>, vector<32x64xbf16>, vector<16x64xf32> -> vector<16x64xf32>
    %383 = vector.broadcast %254 : vector<1x64xf32> to vector<16x64xf32>
    %384 = arith.addf %382, %383 : vector<16x64xf32>
    %cst_157 = arith.constant 5.000000e-01 : f32
    %385 = vector.broadcast %cst_157 : f32 to vector<16x64xf32>
    %386 = arith.mulf %385, %384 : vector<16x64xf32>
    %cst_158 = arith.constant 0.707106769 : f32
    %387 = vector.broadcast %cst_158 : f32 to vector<16x64xf32>
    %388 = arith.mulf %384, %387 : vector<16x64xf32>
    %cst_159 = arith.constant 0.000000e+00 : f32
    %389 = vector.broadcast %cst_159 : f32 to vector<16x64xf32>
    %390 = arith.cmpf oge, %388, %389 : vector<16x64xf32>
    %cst_160 = arith.constant 1.000000e+00 : f32
    %cst_161 = arith.constant -1.000000e+00 : f32
    %391 = vector.broadcast %cst_160 : f32 to vector<16x64xf32>
    %392 = vector.broadcast %cst_161 : f32 to vector<16x64xf32>
    %393 = arith.select %390, %391, %392 : vector<16x64xi1>, vector<16x64xf32>
    %394 = math.absf %388 : vector<16x64xf32>
    %cst_162 = arith.constant 0.327591091 : f32
    %395 = vector.broadcast %cst_162 : f32 to vector<16x64xf32>
    %396 = arith.mulf %395, %394 : vector<16x64xf32>
    %cst_163 = arith.constant 1.000000e+00 : f32
    %397 = vector.broadcast %cst_163 : f32 to vector<16x64xf32>
    %398 = arith.addf %397, %396 : vector<16x64xf32>
    %399 = tpu.reciprocal %398 {approx = true} : vector<16x64xf32> -> vector<16x64xf32>
    %cst_164 = arith.constant 1.06140542 : f32
    %400 = vector.broadcast %cst_164 : f32 to vector<16x64xf32>
    %401 = arith.mulf %400, %399 : vector<16x64xf32>
    %cst_165 = arith.constant -1.45315206 : f32
    %402 = vector.broadcast %cst_165 : f32 to vector<16x64xf32>
    %403 = arith.addf %401, %402 : vector<16x64xf32>
    %404 = arith.mulf %403, %399 : vector<16x64xf32>
    %cst_166 = arith.constant 1.42141378 : f32
    %405 = vector.broadcast %cst_166 : f32 to vector<16x64xf32>
    %406 = arith.addf %404, %405 : vector<16x64xf32>
    %407 = arith.mulf %406, %399 : vector<16x64xf32>
    %cst_167 = arith.constant -0.284496725 : f32
    %408 = vector.broadcast %cst_167 : f32 to vector<16x64xf32>
    %409 = arith.addf %407, %408 : vector<16x64xf32>
    %410 = arith.mulf %409, %399 : vector<16x64xf32>
    %cst_168 = arith.constant 0.254829586 : f32
    %411 = vector.broadcast %cst_168 : f32 to vector<16x64xf32>
    %412 = arith.addf %410, %411 : vector<16x64xf32>
    %413 = arith.mulf %412, %399 : vector<16x64xf32>
    %cst_169 = arith.constant 0.000000e+00 : f32
    %414 = vector.broadcast %cst_169 : f32 to vector<16x64xf32>
    %415 = arith.subf %414, %394 : vector<16x64xf32>
    %416 = arith.mulf %415, %394 : vector<16x64xf32>
    %417 = math.exp %416 : vector<16x64xf32>
    %418 = arith.mulf %413, %417 : vector<16x64xf32>
    %cst_170 = arith.constant 1.000000e+00 : f32
    %419 = vector.broadcast %cst_170 : f32 to vector<16x64xf32>
    %420 = arith.subf %419, %418 : vector<16x64xf32>
    %421 = arith.mulf %393, %420 : vector<16x64xf32>
    %cst_171 = arith.constant 1.000000e+00 : f32
    %422 = vector.broadcast %cst_171 : f32 to vector<16x64xf32>
    %423 = arith.addf %422, %421 : vector<16x64xf32>
    %424 = arith.mulf %386, %423 : vector<16x64xf32>
    %425 = arith.truncf %424 : vector<16x64xf32> to vector<16x64xbf16>
    %cst_172 = arith.constant dense<0.000000e+00> : vector<16x32xf32>
    %426 = tpu.matmul %425, %256, %cst_172 {dimension_numbers = #tpu.dot_dimension_numbers<[1], [0], [0], [1], [0, 0, 1, 1], [], []>} : vector<16x64xbf16>, vector<64x32xbf16>, vector<16x32xf32> -> vector<16x32xf32>
    %427 = vector.broadcast %258 : vector<1x32xf32> to vector<16x32xf32>
    %428 = arith.addf %426, %427 : vector<16x32xf32>
    %429 = arith.addf %428, %380 : vector<16x32xf32>
    %cst_173 = arith.constant dense<0.000000e+00> : vector<16xf32>
    %430 = vector.multi_reduction <add>, %429, %cst_173 [1] : vector<16x32xf32> to vector<16xf32>
    %431 = vector.shape_cast %430 : vector<16xf32> to vector<16x1xf32>
    %cst_174 = arith.constant 3.200000e+01 : f32
    %432 = vector.broadcast %cst_174 : f32 to vector<16x1xf32>
    %433 = arith.divf %431, %432 : vector<16x1xf32>
    %434 = vector.broadcast %433 : vector<16x1xf32> to vector<16x32xf32>
    %435 = arith.subf %429, %434 : vector<16x32xf32>
    %436 = arith.mulf %435, %435 : vector<16x32xf32>
    %cst_175 = arith.constant dense<0.000000e+00> : vector<16xf32>
    %437 = vector.multi_reduction <add>, %436, %cst_175 [1] : vector<16x32xf32> to vector<16xf32>
    %438 = vector.shape_cast %437 : vector<16xf32> to vector<16x1xf32>
    %cst_176 = arith.constant 3.200000e+01 : f32
    %439 = vector.broadcast %cst_176 : f32 to vector<16x1xf32>
    %440 = arith.divf %438, %439 : vector<16x1xf32>
    %441 = vector.broadcast %433 : vector<16x1xf32> to vector<16x32xf32>
    %442 = arith.subf %429, %441 : vector<16x32xf32>
    %cst_177 = arith.constant 9.99999996E-13 : f32
    %443 = vector.broadcast %cst_177 : f32 to vector<16x1xf32>
    %444 = arith.addf %440, %443 : vector<16x1xf32>
    %445 = math.rsqrt %444 : vector<16x1xf32>
    %446 = vector.broadcast %445 : vector<16x1xf32> to vector<16x32xf32>
    %447 = arith.mulf %442, %446 : vector<16x32xf32>
    %448 = vector.broadcast %260 : vector<1x32xf32> to vector<16x32xf32>
    %449 = arith.mulf %447, %448 : vector<16x32xf32>
    %450 = vector.broadcast %262 : vector<1x32xf32> to vector<16x32xf32>
    %451 = arith.addf %449, %450 : vector<16x32xf32>
    %452 = vector.extract_strided_slice %451 {offsets = [0, 0], sizes = [8, 32], strides = [1, 1]} : vector<16x32xf32> to vector<8x32xf32>
    %cst_178 = arith.constant dense<0.000000e+00> : vector<32xf32>
    %453 = vector.multi_reduction <add>, %452, %cst_178 [0] : vector<8x32xf32> to vector<32xf32>
    %454 = vector.shape_cast %453 : vector<32xf32> to vector<1x32xf32>
    %455 = vector.extract_strided_slice %452 {offsets = [0, 0], sizes = [1, 32], strides = [1, 1]} : vector<8x32xf32> to vector<1x32xf32>
    %456 = arith.subf %454, %455 : vector<1x32xf32>
    %457 = vector.extract_strided_slice %451 {offsets = [8, 0], sizes = [8, 32], strides = [1, 1]} : vector<16x32xf32> to vector<8x32xf32>
    %cst_179 = arith.constant dense<0.000000e+00> : vector<32xf32>
    %458 = vector.multi_reduction <add>, %457, %cst_179 [0] : vector<8x32xf32> to vector<32xf32>
    %459 = vector.shape_cast %458 : vector<32xf32> to vector<1x32xf32>
    %460 = vector.extract_strided_slice %457 {offsets = [0, 0], sizes = [1, 32], strides = [1, 1]} : vector<8x32xf32> to vector<1x32xf32>
    %461 = arith.subf %459, %460 : vector<1x32xf32>
    %462 = tpu.concatenate %456, %461 in 0 : vector<1x32xf32>, vector<1x32xf32> -> vector<2x32xf32>
    %cst_180 = arith.constant 0.142857149 : f32
    %463 = vector.broadcast %cst_180 : f32 to vector<2x32xf32>
    %464 = arith.mulf %462, %463 : vector<2x32xf32>
    %465 = arith.mulf %464, %464 : vector<2x32xf32>
    %cst_181 = arith.constant dense<0.000000e+00> : vector<2xf32>
    %466 = vector.multi_reduction <add>, %465, %cst_181 [1] : vector<2x32xf32> to vector<2xf32>
    %467 = vector.shape_cast %466 : vector<2xf32> to vector<2x1xf32>
    %468 = math.sqrt %467 : vector<2x1xf32>
    %cst_182 = arith.constant 9.99999996E-13 : f32
    %469 = vector.broadcast %cst_182 : f32 to vector<2x1xf32>
    %470 = arith.maximumf %468, %469 : vector<2x1xf32>
    %471 = tpu.reciprocal %470 {approx = true} : vector<2x1xf32> -> vector<2x1xf32>
    %472 = vector.broadcast %471 : vector<2x1xf32> to vector<2x32xf32>
    %473 = arith.mulf %464, %472 : vector<2x32xf32>
    %474 = arith.truncf %473 : vector<2x32xf32> to vector<2x32xbf16>
    %c0_183 = arith.constant 0 : index
    %c0_184 = arith.constant 0 : index
    %475 = vector.load %arg16[%c0_183, %c0_184] : memref<32x128xbf16, #tpu.memory_space<vmem>>, vector<32x128xbf16>
    %cst_185 = arith.constant dense<0.000000e+00> : vector<2x128xf32>
    %476 = tpu.matmul %474, %475, %cst_185 {dimension_numbers = #tpu.dot_dimension_numbers<[1], [0], [0], [1], [0, 0, 1, 1], [], []>} : vector<2x32xbf16>, vector<32x128xbf16>, vector<2x128xf32> -> vector<2x128xf32>
    %c0_186 = arith.constant 0 : index
    %c0_187 = arith.constant 0 : index
    %477 = vector.load %arg18[%c0_186, %c0_187] : memref<2x128xf32, #tpu.memory_space<vmem>>, vector<2x128xf32>
    tpu.vector_store %arg18[%c0_186, %c0_187], %476 {strides = array<i32>} : memref<2x128xf32, #tpu.memory_space<vmem>>, vector<2x128xf32>,
    %cst_188 = arith.constant 0.000000e+00 : f32
    %478 = vector.broadcast %cst_188 : f32 to vector<2x96xf32>
    %479 = tpu.concatenate %464, %478 in 1 : vector<2x32xf32>, vector<2x96xf32> -> vector<2x128xf32>
    %c0_189 = arith.constant 0 : index
    %c0_190 = arith.constant 0 : index
    %480 = vector.load %arg17[%c0_189, %c0_190] : memref<2x128xf32, #tpu.memory_space<vmem>>, vector<2x128xf32>
    tpu.vector_store %arg17[%c0_189, %c0_190], %479 {strides = array<i32>} : memref<2x128xf32, #tpu.memory_space<vmem>>, vector<2x128xf32>,
    return
  }
}

</mosaic_0001>

<bundles_post_ra>
// kernel: bert_for_ot_forward.1
= control target key start
LH: loop header
LB: loop body
LE: loop exit
PB: predicated region body
PF: predicated region fallthrough
CT: control target
= control target key end

     0   :  { %s3538_s0 = inlined_call_operand.vmem [shape: f32[16,32], index: 0, kind: input, shape index: {}]   ;;  %s3539_s1 = inlined_call_operand.vmem [shape: f32[16,16], index: 1, kind: input, shape index: {}]   ;;  %s3540_s2 = inlined_call_operand.vmem [shape: f32[1,32], index: 2, kind: input, shape index: {}]   ;;  %s3541_s3 = inlined_call_operand.vmem [shape: f32[1,32], index: 3, kind: input, shape index: {}]   ;;  %s3542_s4 = inlined_call_operand.vmem [shape: bf16[2,32,96], index: 4, kind: input, shape index: {}]   ;;  %s3543_s5 = inlined_call_operand.vmem [shape: f32[2,1,96], index: 5, kind: input, shape index: {}]   ;;  %s3544_s6 = inlined_call_operand.vmem [shape: bf16[2,32,32], index: 6, kind: input, shape index: {}]   ;;  %s3545_s7 = inlined_call_operand.vmem [shape: f32[2,1,32], index: 7, kind: input, shape index: {}]   ;;  %s3546_s8 = inlined_call_operand.vmem [shape: f32[2,1,32], index: 8, kind: input, shape index: {}]   ;;  %s3547_s9 = inlined_call_operand.vmem [shape: f32[2,1,32], index: 9, kind: input, shape index: {}]   ;;  %s3548_s10 = inlined_call_operand.vmem [shape: bf16[2,32,64], index: 10, kind: input, shape index: {}]   ;;  %s3549_s11 = inlined_call_operand.vmem [shape: f32[2,1,64], index: 11, kind: input, shape index: {}]   ;;  %s3550_s12 = inlined_call_operand.vmem [shape: bf16[2,64,32], index: 12, kind: input, shape index: {}]   ;;  %s3551_s13 = inlined_call_operand.vmem [shape: f32[2,1,32], index: 13, kind: input, shape index: {}]   ;;  %s3552_s14 = inlined_call_operand.vmem [shape: f32[2,1,32], index: 14, kind: input, shape index: {}]   ;;  %s3553_s15 = inlined_call_operand.vmem [shape: f32[2,1,32], index: 15, kind: input, shape index: {}]   ;;  %s3554_s16 = inlined_call_operand.vmem [shape: bf16[32,128], index: 16, kind: input, shape index: {}]   ;;  %s3555_s17 = inlined_call_operand.hbm [shape: f32[2,128], index: 17, kind: output, shape index: {0}]   ;;  %s3556_s18 = inlined_call_operand.hbm [shape: f32[2,128], index: 18, kind: output, shape index: {1}]  }
   0x1   :  { %3562 = sst [smem:[#allocation8_spill]] %s3538_s0 }
   0x2   :  { %3563 = sst [smem:[#allocation9_spill]] %s3539_s1 }
   0x3   :  { %3564 = sst [smem:[#allocation10_spill]] %s3540_s2 }
   0x4   :  { %24 = vsyncpa [#allocation3], 0  ;;  %s3565_s29 = sld [smem:[#allocation8_spill]]  ;;  %vm65_vm0 = vcmask 261120  }
   0xa   :  { %v61_v0 = vld [vmem:[%s3565_s29] sm:$0xff]  ;;  %v62_v1 = vld [vmem:[%s3565_s29 + $0x8] sm:$0xff] }
   0xb   :  { %v66_v2 = vsel %vm65_vm0, %v61_v0, 0.0  ;;  %v69_v3 = vsel %vm65_vm0, %v62_v1, 0.0 }
   0xc   :  { %67 = vadd.xlane.f32.xlu0 %v66_v2 }
  0x10   :  { %70 = vadd.xlane.f32.xlu0 %v69_v3 }
  0x11   :  { %25 = vsyncpa [#allocation5], 0  ;;  %v2761_v14 = vld [vmem:[%s3542_s4] sm:$0xff]   ;;  %v2933_v15 = vmov 0.0   ;;  %v2762_v16 = vld [vmem:[%s3542_s4 + $0x8] sm:$0xff]   ;;  %vm2934_vm1 = vmmov 0  }
  0x12   :  { %2537 = vmatprep.subr.bf16.mxu0 %v2933_v15  ;;  %2545 = vmatprep.subr.bf16.mxu1 %v2933_v15  ;;  %s3566_s23 = sld [smem:[#allocation10_spill]]  ;;  %v2370_v29 = vld [vmem:[%s3541_s3] ss:$0 sm:$0xff]  ;;  %s2935_s3 = smov 88   ;;  %vm206_vm2 = vcmask 64512   ;;  %vm254_vm3 = vcmask 130048  }
  0x13   :  { %2538 = vmatpush3.bf16.msra.mxu0 %v2761_v14  ;;  %2541 = vmatprep.mubr.msk.bf16.mxu0 %vm2934_vm1, %v2933_v15  ;;  %v2371_v34 = vld [vmem:[%s3543_s5] ss:$0 sm:$0xff]  ;;  %s2936_s28 = smov 96   ;;  %s2937_s29 = smov 120   ;;  %vm451_vm4 = vcmask 1043456   ;;  %vm1083_vm7 = vcmask 523264  }
  0x14   :  { %2539 = vmatprep.subr.bf16.mxu0 %v2933_v15  ;;  %2547 = vmatprep.mubr.msk.bf16.mxu1 %vm2934_vm1, %v2933_v15  ;;  %s3567_s19 = sld [smem:[#allocation9_spill]]  ;;  %s2938_s21 = smov 64   ;;  %vm2260_vm10 = vcmask 1040384   ;;  %vm2264_vm11 = vcmask 254976  }
  0x15   :  { %s2939_s22 = smov 80   ;;  %s2940_s2 = smov 112  }
  0x16   :  { %s3560_s30 = smov 48   ;;  %s3561_s0 = smov 104  }
  0x17   :  { %2540 = vmatpush3.bf16.msra.mxu0 %v2762_v16  ;;  %s2944_s1 = smov 72   ;;  %s3559_s25 = smov 40  }
  0x18   :  { %2551 = vmatprep.subr.bf16.mxu0 %v2933_v15  ;;  %v2369_v25 = vld [vmem:[%s3566_s23] ss:$0 sm:$0xff]  ;;  %s2941_s23 = smov 56   ;;  %s3568_s26 = smov 104  }
  0x19   :  { %s3570_s20 = smov 40  }
  0x1a   :  { %v3108_v47 = vld [vmem:[%s3567_s19] sm:$0xff]  ;;  %v3113_v49 = vld [vmem:[%s3567_s19 + $0x8] sm:$0xff] }
  0x99   :  { %v68_v4 = vpop.xlane.xlu0 %67 }
  0x9a   :  { %v73_v5 = vmul.f32 0.03125, %v68_v4 }
  0x9c   :  { %v75_v6 = vsub.f32 %v61_v0, %v73_v5 }
  0x9d   :  { %v71_v7 = vpop.xlane.xlu0 %70 }
  0x9e   :  { %v74_v8 = vmul.f32 0.03125, %v71_v7  ;;  %v77_v9 = vmul.f32 %v75_v6, %v75_v6 }
  0xa0   :  { %v76_v10 = vsub.f32 %v62_v1, %v74_v8  ;;  %v79_v11 = vsel %vm65_vm0, %v77_v9, 0.0 }
  0xa1   :  { %80 = vadd.xlane.f32.xlu1 %v79_v11 }
  0xa2   :  { %v78_v12 = vmul.f32 %v76_v10, %v76_v10 }
  0xa4   :  { %v82_v13 = vsel %vm65_vm0, %v78_v12, 0.0 }
  0xa5   :  { %83 = vadd.xlane.f32.xlu1 %v82_v13 }
 0x12e   :  { %v81_v17 = vpop.xlane.xlu1 %80 }
 0x12f   :  { %v85_v18 = vmul.f32 0.03125, %v81_v17 }
 0x131   :  { %v87_v19 = vadd.f32 1e-12, %v85_v18 }
 0x132   :  { %v84_v20 = vpop.xlane.xlu1 %83 }
 0x133   :  { %2779 = vrsqrt.f32 %v87_v19  ;;  %v86_v21 = vmul.f32 0.03125, %v84_v20 }
 0x135   :  { %v88_v22 = vadd.f32 1e-12, %v86_v21 }
 0x137   :  { %2781 = vrsqrt.f32 %v88_v22 }
 0x13d   :  { %v2780_v23 = vpop.eup %2779 }
 0x13e   :  { %v91_v24 = vmul.f32 %v2780_v23, %v75_v6 }
 0x140   :  { %v99_v28 = vmul.f32 %v2369_v25, %v91_v24 }
 0x141   :  { %v2782_v26 = vpop.eup %2781 }
 0x142   :  { %v92_v27 = vmul.f32 %v2782_v26, %v76_v10  ;;  %v3074_v31 = vadd.f32 %v2370_v29, %v99_v28 }
 0x144   :  { %v100_v30 = vmul.f32 %v2369_v25, %v92_v27 }
 0x146   :  { %v3076_v32 = vadd.f32 %v2370_v29, %v100_v30 }
 0x148   :  { %v139_v33 = vpack.c.bf16 %v3076_v32, %v3074_v31 }
 0x14a   :  { %2542 = vmatmul.mubr.msk.bf16.vlgmr.msra.gmra.mrb[0].mxu0 %vm65_vm0, %v139_v33 }
 0x14b   :  { %2553 = vmatprep.mubr.msk.bf16.mxu0 %vm2934_vm1, %v2933_v15 }
 0x21d   :  { %v195_v35 = vpop.f32.mrb[0].mxu0 }
 0x21e   :  { %v2543_v36 = vpop.f32.mrb[1].mxu0  ;;  %v196_v38 = vadd.f32 %v2371_v34, %v195_v35 }
 0x21f   :  { %v198_v37 = vpop.f32.mrb[2].mxu0 }
 0x220   :  { %v199_v39 = vadd.f32 %v2371_v34, %v198_v37  ;;  %v2544_v40 = vpop.f32.mrb[3].mxu0 }
 0x221   :  { %v116_v40 = vld [vmem:[%s3544_s6] sm:$0xf] }
 0x222   :  { %v3086_v41 = vpack.c.bf16 %v199_v39, %v196_v38 }
 0x224   :  { %328 = vrot.lane.b32.xlu1 %v3086_v41, %s2935_s3  ;;  %204 = vrot.lane.b32.xlu0 %v3086_v41, %s2936_s28 }
 0x228   :  { %326 = vrot.lane.b32.xlu1 %v3086_v41, %s2937_s29 }
 0x296   :  { %v205_v42 = vpop.permute.xlu0 %204  ;;  %v329_v44 = vpop.permute.xlu1 %328 }
 0x297   :  { %v211_v43 = vsel %vm206_vm2, %v205_v42, 0  ;;  %v334_v45 = vsel %vm206_vm2, %v329_v44, 0  ;;  %v500_v42 = vsel %vm451_vm4, %v116_v40, 0 }
 0x298   :  { %2546 = vmatpush3.bf16.xpose.msra.mxu1 %v211_v43  ;;  %v117_v43 = vld [vmem:[%s3544_s6 + $0x4] sm:$0xf] }
 0x299   :  { %2557 = vmatprep.subr.bf16.mxu1 %v2933_v15  ;;  %v453_v44 = vsel %vm451_vm4, %v117_v43, 0 }
 0x29a   :  { %v327_v46 = vpop.permute.xlu1 %326 }
 0x29f   :  { %2548 = vmatmul.mubr.msk.bf16.vlgmr.msra.gmra.mrb[0].mxu1 %vm206_vm2, %v3086_v41 }
 0x2a0   :  { %2558 = vmatpush3.bf16.xpose.msra.mxu1 %v334_v45  ;;  %2559 = vmatprep.mubr.msk.bf16.mxu1 %vm2934_vm1, %v2933_v15 }
 0x2a1   :  { %2569 = vmatprep.subr.bf16.mxu1 %v2933_v15 }
 0x2a7   :  { %2560 = vmatmul.mubr.msk.bf16.vlgmr.msra.gmra.mrb[4].mxu1 %vm206_vm2, %v327_v46 }
 0x2a8   :  { %2571 = vmatprep.mubr.msk.bf16.mxu1 %vm2934_vm1, %v2933_v15  ;;  %2570 = vmatpush3.bf16.msra.mxu1 %v453_v44 }
 0x2a9   :  { %2581 = vmatprep.subr.bf16.mxu1 %v2933_v15 }
 0x372   :  { %v247_v48 = vpop.f32.mrb[0].mxu1 }
 0x373   :  { %v248_v50 = vadd.f32 %v247_v48, %v3108_v47  ;;  %v2549_v51 = vpop.f32.mrb[1].mxu1 }
 0x374   :  { %v250_v52 = vpop.f32.mrb[2].mxu1 }
 0x375   :  { %v251_v53 = vadd.f32 %v250_v52, %v3113_v49  ;;  %v2550_v54 = vpop.f32.mrb[3].mxu1  ;;  %v255_v55 = vsel %vm254_vm3, %v248_v50, -inf }
 0x376   :  { %256 = vmax.xlane.f32.xlu1 %v255_v55 }
 0x377   :  { %v258_v56 = vsel %vm254_vm3, %v251_v53, -inf }
 0x378   :  { %259 = vmax.xlane.f32.xlu0 %v258_v56 }
 0x37a   :  { %v370_v57 = vpop.f32.mrb[4].mxu1 }
 0x37b   :  { %v371_v58 = vadd.f32 %v370_v57, %v3108_v47  ;;  %v2561_v59 = vpop.f32.mrb[5].mxu1 }
 0x37c   :  { %v373_v60 = vpop.f32.mrb[6].mxu1 }
 0x37d   :  { %v374_v61 = vadd.f32 %v373_v60, %v3113_v49  ;;  %v2562_v62 = vpop.f32.mrb[7].mxu1  ;;  %v377_v63 = vsel %vm254_vm3, %v371_v58, -inf }
 0x37e   :  { %378 = vmax.xlane.f32.xlu0 %v377_v63 }
 0x37f   :  { %v380_v0 = vsel %vm254_vm3, %v374_v61, -inf }
 0x382   :  { %381 = vmax.xlane.f32.xlu0 %v380_v0 }
 0x403   :  { %v257_v1 = vpop.xlane.xlu1 %256 }
 0x404   :  { %v261_v2 = vsub.f32 %v248_v50, %v257_v1 }
 0x405   :  { %v260_v3 = vpop.xlane.xlu0 %259 }
 0x406   :  { %v263_v4 = vmul.f32 1.442695, %v261_v2  ;;  %v262_v5 = vsub.f32 %v251_v53, %v260_v3 }
 0x408   :  { %2783 = vpow2.f32 %v263_v4  ;;  %v265_v6 = vmul.f32 1.442695, %v262_v5 }
 0x40a   :  { %2785 = vpow2.f32 %v265_v6 }
 0x40b   :  { %v379_v7 = vpop.xlane.xlu0 %378 }
 0x40c   :  { %v383_v8 = vsub.f32 %v371_v58, %v379_v7 }
 0x40e   :  { %v385_v9 = vmul.f32 1.442695, %v383_v8 }
 0x40f   :  { %v382_v10 = vpop.xlane.xlu0 %381 }
 0x410   :  { %2787 = vpow2.f32 %v385_v9  ;;  %v384_v11 = vsub.f32 %v374_v61, %v382_v10 }
 0x412   :  { %v2784_v12 = vpop.eup %2783  ;;  %v387_v13 = vmul.f32 1.442695, %v384_v11 }
 0x413   :  { %v267_v14 = vsel %vm254_vm3, %v2784_v12, 0.0 }
 0x414   :  { %v2786_v16 = vpop.eup %2785  ;;  %2789 = vpow2.f32 %v387_v13  ;;  %268 = vadd.xlane.f32.xlu1 %v267_v14 }
 0x415   :  { %v270_v17 = vsel %vm254_vm3, %v2786_v16, 0.0 }
 0x416   :  { %271 = vadd.xlane.f32.xlu0 %v270_v17 }
 0x41a   :  { %v2788_v18 = vpop.eup %2787 }
 0x41b   :  { %v389_v19 = vsel %vm254_vm3, %v2788_v18, 0.0 }
 0x41c   :  { %390 = vadd.xlane.f32.xlu1 %v389_v19 }
 0x41e   :  { %v2790_v20 = vpop.eup %2789 }
 0x41f   :  { %v392_v21 = vsel %vm254_vm3, %v2790_v20, 0.0 }
 0x420   :  { %393 = vadd.xlane.f32.xlu0 %v392_v21 }
 0x42d   :  { %278 = vrot.lane.b32.xlu1 %v3086_v41, %s2938_s21 }
 0x431   :  { %545 = vrot.lane.b32.xlu1 %v3086_v41, %s2939_s22 }
 0x435   :  { %543 = vrot.lane.b32.xlu1 %v3086_v41, %s2940_s2 }
 0x436   :  { %400 = vrot.lane.b32.xlu0 %v3086_v41, %s2941_s23 }
 0x4a1   :  { %v269_v22 = vpop.xlane.xlu1 %268 }
 0x4a2   :  { %2791 = vrcp.f32 %v269_v22 }
 0x4a3   :  { %v272_v23 = vpop.xlane.xlu0 %271 }
 0x4a4   :  { %2793 = vrcp.f32 %v272_v23 }
 0x4a9   :  { %v391_v24 = vpop.xlane.xlu1 %390 }
 0x4aa   :  { %2795 = vrcp.f32 %v391_v24 }
 0x4ac   :  { %v2792_v25 = vpop.eup %2791 }
 0x4ad   :  { %v279_v26 = vpop.permute.xlu1 %278  ;;  %v394_v27 = vpop.xlane.xlu0 %393  ;;  %v275_v29 = vmul.f32 %v2792_v25, %v2784_v12 }
 0x4ae   :  { %v2794_v28 = vpop.eup %2793  ;;  %2797 = vrcp.f32 %v394_v27  ;;  %2552 = vmatpush3.bf16.msra.mxu0 %v279_v26 }
 0x4af   :  { %v276_v30 = vmul.f32 %v2794_v28, %v2786_v16  ;;  %2563 = vmatprep.subr.bf16.mxu0 %v2933_v15 }
 0x4b1   :  { %v401_v33 = vpop.permute.xlu0 %400  ;;  %v277_v34 = vpack.c.bf16 %v276_v30, %v275_v29  ;;  %v546_v54 = vpop.permute.xlu1 %545 }
 0x4b2   :  { %v551_v58 = vsel %vm206_vm2, %v546_v54, 0 }
 0x4b3   :  { %2554 = vmatmul.mubr.msk.bf16.vlgmr.msra.gmra.mrb[4].mxu0 %vm254_vm3, %v277_v34 }
 0x4b4   :  { %2564 = vmatpush3.bf16.msra.mxu0 %v401_v33  ;;  %2565 = vmatprep.mubr.msk.bf16.mxu0 %vm2934_vm1, %v2933_v15  ;;  %v2796_v35 = vpop.eup %2795 }
 0x4b5   :  { %2575 = vmatprep.subr.bf16.mxu0 %v2933_v15  ;;  %v397_v37 = vmul.f32 %v2796_v35, %v2788_v18  ;;  %v544_v59 = vpop.permute.xlu1 %543 }
 0x4b8   :  { %v2798_v36 = vpop.eup %2797 }
 0x4b9   :  { %v398_v38 = vmul.f32 %v2798_v36, %v2790_v20 }
 0x4bb   :  { %v399_v39 = vpack.c.bf16 %v398_v38, %v397_v37  ;;  %v118_v38 = vld [vmem:[%s3544_s6 + $0x8] sm:$0xf] }
 0x4bd   :  { %2566 = vmatmul.mubr.msk.bf16.vlgmr.msra.gmra.mrb[8].mxu0 %vm254_vm3, %v399_v39  ;;  %v669_v39 = vsel %vm451_vm4, %v118_v38, 0 }
 0x4be   :  { %2577 = vmatprep.mubr.msk.bf16.mxu0 %vm2934_vm1, %v2933_v15  ;;  %2576 = vmatpush3.bf16.msra.mxu0 %v500_v42 }
 0x4bf   :  { %2587 = vmatprep.subr.bf16.mxu0 %v2933_v15 }
 0x586   :  { %v318_v45 = vpop.f32.mrb[4].mxu0 }
 0x587   :  { %v2555_v46 = vpop.f32.mrb[5].mxu0 }
 0x588   :  { %v321_v48 = vpop.f32.mrb[6].mxu0 }
 0x589   :  { %v325_v50 = vpack.c.bf16 %v321_v48, %v318_v45  ;;  %v2556_v51 = vpop.f32.mrb[7].mxu0 }
 0x58b   :  { %2578 = vmatmul.mubr.msk.bf16.vlgmr.msra.gmra.mrb[12].mxu0 %vm206_vm2, %v325_v50 }
 0x58c   :  { %2589 = vmatprep.mubr.msk.bf16.mxu0 %vm2934_vm1, %v2933_v15 }
 0x590   :  { %v440_v52 = vpop.f32.mrb[8].mxu0 }
 0x591   :  { %v2567_v53 = vpop.f32.mrb[9].mxu0 }
 0x592   :  { %v443_v55 = vpop.f32.mrb[10].mxu0 }
 0x593   :  { %v447_v56 = vpack.c.bf16 %v443_v55, %v440_v52  ;;  %v2568_v57 = vpop.f32.mrb[11].mxu0 }
 0x595   :  { %2572 = vmatmul.mubr.msk.bf16.vlgmr.msra.gmra.mrb[8].mxu1 %vm206_vm2, %v447_v56 }
 0x596   :  { %2582 = vmatpush3.bf16.xpose.msra.mxu1 %v551_v58  ;;  %2583 = vmatprep.mubr.msk.bf16.mxu1 %vm2934_vm1, %v2933_v15 }
 0x597   :  { %2593 = vmatprep.subr.bf16.mxu1 %v2933_v15 }
 0x59d   :  { %2584 = vmatmul.mubr.msk.bf16.vlgmr.msra.gmra.mrb[12].mxu1 %vm206_vm2, %v544_v59 }
 0x59e   :  { %2595 = vmatprep.mubr.msk.bf16.mxu1 %vm2934_vm1, %v2933_v15  ;;  %2594 = vmatpush3.bf16.msra.mxu1 %v669_v39 }
 0x59f   :  { %2605 = vmatprep.subr.bf16.mxu1 %v2933_v15 }
 0x65e   :  { %v536_v60 = vpop.f32.mrb[12].mxu0 }
 0x65f   :  { %v2579_v61 = vpop.f32.mrb[13].mxu0 }
 0x660   :  { %v539_v62 = vpop.f32.mrb[14].mxu0 }
 0x661   :  { %v2580_v63 = vpop.f32.mrb[15].mxu0 }
 0x668   :  { %v489_v0 = vpop.f32.mrb[8].mxu1 }
 0x669   :  { %v3164_v1 = vadd.f32 %v536_v60, %v489_v0  ;;  %v2573_v2 = vpop.f32.mrb[9].mxu1 }
 0x66a   :  { %v492_v3 = vpop.f32.mrb[10].mxu1 }
 0x66b   :  { %v3166_v4 = vadd.f32 %v539_v62, %v492_v3  ;;  %v2574_v5 = vpop.f32.mrb[11].mxu1 }
 0x670   :  { %v587_v6 = vpop.f32.mrb[12].mxu1 }
 0x671   :  { %v588_v7 = vadd.f32 %v587_v6, %v3108_v47  ;;  %v2585_v8 = vpop.f32.mrb[13].mxu1 }
 0x672   :  { %v590_v9 = vpop.f32.mrb[14].mxu1 }
 0x673   :  { %v591_v10 = vadd.f32 %v590_v9, %v3113_v49  ;;  %v2586_v11 = vpop.f32.mrb[15].mxu1  ;;  %v594_v12 = vsel %vm254_vm3, %v588_v7, -inf }
 0x674   :  { %595 = vmax.xlane.f32.xlu1 %v594_v12 }
 0x675   :  { %v597_v13 = vsel %vm254_vm3, %v591_v10, -inf }
 0x676   :  { %598 = vmax.xlane.f32.xlu0 %v597_v13 }
 0x685   :  { %617 = vrot.lane.b32.xlu1 %v3086_v41, %s3560_s30 }
 0x689   :  { %714 = vrot.lane.b32.xlu1 %v3086_v41, %s3561_s0 }
 0x701   :  { %v596_v14 = vpop.xlane.xlu1 %595 }
 0x702   :  { %v600_v16 = vsub.f32 %v588_v7, %v596_v14 }
 0x703   :  { %v599_v17 = vpop.xlane.xlu0 %598 }
 0x704   :  { %v602_v18 = vmul.f32 1.442695, %v600_v16  ;;  %v601_v19 = vsub.f32 %v591_v10, %v599_v17 }
 0x705   :  { %v618_v20 = vpop.permute.xlu1 %617 }
 0x706   :  { %2799 = vpow2.f32 %v602_v18  ;;  %v604_v21 = vmul.f32 1.442695, %v601_v19  ;;  %2588 = vmatpush3.bf16.msra.mxu0 %v618_v20 }
 0x707   :  { %2599 = vmatprep.subr.bf16.mxu0 %v2933_v15 }
 0x708   :  { %2801 = vpow2.f32 %v604_v21 }
 0x709   :  { %v715_v37 = vpop.permute.xlu1 %714 }
 0x710   :  { %v2800_v22 = vpop.eup %2799 }
 0x711   :  { %v606_v23 = vsel %vm254_vm3, %v2800_v22, 0.0 }
 0x712   :  { %v2802_v24 = vpop.eup %2801  ;;  %607 = vadd.xlane.f32.xlu0 %v606_v23  ;;  %v2387_v23 = vld [vmem:[%s3545_s7] ss:$0 sm:$0xff] }
 0x713   :  { %v609_v25 = vsel %vm254_vm3, %v2802_v24, 0.0 }
 0x716   :  { %610 = vadd.xlane.f32.xlu0 %v609_v25 }
 0x72c   :  { %716 = vrot.lane.b32.xlu0 %v3086_v41, %s2944_s1 }
 0x79f   :  { %v608_v26 = vpop.xlane.xlu0 %607 }
 0x7a0   :  { %2803 = vrcp.f32 %v608_v26 }
 0x7a3   :  { %v611_v27 = vpop.xlane.xlu0 %610 }
 0x7a4   :  { %2805 = vrcp.f32 %v611_v27 }
 0x7a7   :  { %v717_v34 = vpop.permute.xlu0 %716 }
 0x7a8   :  { %v722_v36 = vsel %vm206_vm2, %v717_v34, 0 }
 0x7aa   :  { %v2804_v28 = vpop.eup %2803 }
 0x7ab   :  { %v614_v30 = vmul.f32 %v2804_v28, %v2800_v22 }
 0x7ae   :  { %v2806_v29 = vpop.eup %2805 }
 0x7af   :  { %v615_v33 = vmul.f32 %v2806_v29, %v2802_v24 }
 0x7b1   :  { %v616_v35 = vpack.c.bf16 %v615_v33, %v614_v30 }
 0x7b3   :  { %2590 = vmatmul.mubr.msk.bf16.vlgmr.msra.gmra.mrb[16].mxu0 %vm254_vm3, %v616_v35 }
 0x7b4   :  { %2600 = vmatpush3.bf16.xpose.msra.mxu0 %v722_v36  ;;  %2601 = vmatprep.mubr.msk.bf16.mxu0 %vm2934_vm1, %v2933_v15 }
 0x7b5   :  { %2611 = vmatprep.subr.bf16.mxu0 %v2933_v15 }
 0x7bb   :  { %2602 = vmatmul.mubr.msk.bf16.vlgmr.msra.gmra.mrb[20].mxu0 %vm206_vm2, %v715_v37 }
 0x7bc   :  { %2613 = vmatprep.mubr.msk.bf16.mxu0 %vm2934_vm1, %v2933_v15 }
 0x886   :  { %v657_v40 = vpop.f32.mrb[16].mxu0 }
 0x887   :  { %v2591_v42 = vpop.f32.mrb[17].mxu0 }
 0x888   :  { %v660_v43 = vpop.f32.mrb[18].mxu0 }
 0x889   :  { %v664_v44 = vpack.c.bf16 %v660_v43, %v657_v40  ;;  %v2592_v45 = vpop.f32.mrb[19].mxu0 }
 0x88b   :  { %2596 = vmatmul.mubr.msk.bf16.vlgmr.msra.gmra.mrb[16].mxu1 %vm206_vm2, %v664_v44 }
 0x88c   :  { %2607 = vmatprep.mubr.msk.bf16.mxu1 %vm2934_vm1, %v2933_v15 }
 0x88e   :  { %v758_v46 = vpop.f32.mrb[20].mxu0 }
 0x88f   :  { %v759_v48 = vadd.f32 %v758_v46, %v3108_v47  ;;  %v2603_v50 = vpop.f32.mrb[21].mxu0 }
 0x890   :  { %v761_v51 = vpop.f32.mrb[22].mxu0  ;;  %v2764_v50 = vld [vmem:[%s3548_s10 + $0x8] sm:$0xff]  }
 0x891   :  { %v762_v52 = vadd.f32 %v761_v51, %v3113_v49  ;;  %v2604_v53 = vpop.f32.mrb[23].mxu0  ;;  %v765_v54 = vsel %vm254_vm3, %v759_v48, -inf }
 0x892   :  { %766 = vmax.xlane.f32.xlu1 %v765_v54 }
 0x893   :  { %v768_v55 = vsel %vm254_vm3, %v762_v52, -inf }
 0x894   :  { %769 = vmax.xlane.f32.xlu0 %v768_v55 }
 0x91f   :  { %v767_v56 = vpop.xlane.xlu1 %766 }
 0x920   :  { %v771_v57 = vsub.f32 %v759_v48, %v767_v56 }
 0x921   :  { %v770_v58 = vpop.xlane.xlu0 %769 }
 0x922   :  { %v773_v59 = vmul.f32 1.442695, %v771_v57  ;;  %v772_v60 = vsub.f32 %v762_v52, %v770_v58 }
 0x924   :  { %2807 = vpow2.f32 %v773_v59  ;;  %v775_v61 = vmul.f32 1.442695, %v772_v60  ;;  %v2388_v59 = vld [vmem:[%s3546_s8] ss:$0 sm:$0xff] }
 0x926   :  { %2809 = vpow2.f32 %v775_v61 }
 0x92e   :  { %v2808_v62 = vpop.eup %2807 }
 0x92f   :  { %v777_v63 = vsel %vm254_vm3, %v2808_v62, 0.0 }
 0x930   :  { %v2810_v0 = vpop.eup %2809  ;;  %778 = vadd.xlane.f32.xlu0 %v777_v63  ;;  %v2389_v63 = vld [vmem:[%s3547_s9] ss:$0 sm:$0xff] }
 0x931   :  { %v780_v2 = vsel %vm254_vm3, %v2810_v0, 0.0 }
 0x932   :  { %781 = vadd.xlane.f32.xlu1 %v780_v2 }
 0x946   :  { %788 = vrot.lane.b32.xlu0 %v3086_v41, %s3559_s25 }
 0x95e   :  { %v705_v3 = vpop.f32.mrb[16].mxu1 }
 0x95f   :  { %v712_v5 = vadd.f32 %v705_v3, %v3164_v1  ;;  %v2597_v6 = vpop.f32.mrb[17].mxu1  ;;  %v119_v1 = vld [vmem:[%s3544_s6 + $0xc] sm:$0xf] }
 0x960   :  { %v708_v7 = vpop.f32.mrb[18].mxu1  ;;  %v2765_v6 = vld [vmem:[%s3550_s12] sm:$0xff]  }
 0x961   :  { %v713_v8 = vadd.f32 %v708_v7, %v3166_v4  ;;  %v2598_v9 = vpop.f32.mrb[19].mxu1  ;;  %v840_v4 = vsel %vm451_vm4, %v119_v1, 0  ;;  %v2766_v7 = vld [vmem:[%s3550_s12 + $0x8] sm:$0xff]  }
 0x962   :  { %2612 = vmatpush3.bf16.msra.mxu0 %v840_v4  ;;  %v2768_v9 = vld [vmem:[%s3550_s12 + $0x18] sm:$0xff]  }
 0x963   :  { %2625 = vmatprep.subr.bf16.mxu0 %v2933_v15 }
 0x9bd   :  { %v779_v10 = vpop.xlane.xlu0 %778 }
 0x9be   :  { %2811 = vrcp.f32 %v779_v10  ;;  %v2390_v10 = vld [vmem:[%s3549_s11] ss:$0 sm:$0xff] }
 0x9bf   :  { %v782_v11 = vpop.xlane.xlu1 %781 }
 0x9c0   :  { %2813 = vrcp.f32 %v782_v11 }
 0x9c1   :  { %v789_v12 = vpop.permute.xlu0 %788 }
 0x9c2   :  { %2606 = vmatpush3.bf16.msra.mxu1 %v789_v12 }
 0x9c3   :  { %2617 = vmatprep.subr.bf16.mxu1 %v2933_v15 }
 0x9c8   :  { %v2812_v13 = vpop.eup %2811 }
 0x9c9   :  { %v785_v16 = vmul.f32 %v2812_v13, %v2808_v62 }
 0x9ca   :  { %v2814_v14 = vpop.eup %2813 }
 0x9cb   :  { %v786_v41 = vmul.f32 %v2814_v14, %v2810_v0 }
 0x9cd   :  { %v787_v17 = vpack.c.bf16 %v786_v41, %v785_v16 }
 0x9cf   :  { %2608 = vmatmul.mubr.msk.bf16.vlgmr.msra.gmra.mrb[20].mxu1 %vm254_vm3, %v787_v17 }
 0x9d0   :  { %2621 = vmatprep.mubr.msk.bf16.mxu1 %vm2934_vm1, %v2933_v15 }
 0xaa2   :  { %v828_v18 = vpop.f32.mrb[20].mxu1 }
 0xaa3   :  { %v2609_v19 = vpop.f32.mrb[21].mxu1 }
 0xaa4   :  { %v831_v20 = vpop.f32.mrb[22].mxu1 }
 0xaa5   :  { %v835_v21 = vpack.c.bf16 %v831_v20, %v828_v18  ;;  %v2610_v22 = vpop.f32.mrb[23].mxu1 }
 0xaa7   :  { %2614 = vmatmul.mubr.msk.bf16.vlgmr.msra.gmra.mrb[24].mxu0 %vm206_vm2, %v835_v21 }
 0xaa8   :  { %2633 = vmatprep.mubr.msk.bf16.mxu0 %vm2934_vm1, %v2933_v15  ;;  %2626 = vmatpush3.bf16.msra.mxu0 %v2765_v6 }
 0xaa9   :  { %2627 = vmatprep.subr.bf16.mxu0 %v2933_v15 }
 0xaac   :  { %2628 = vmatpush3.bf16.msra.mxu0 %v2766_v7 }
 0xaad   :  { %2629 = vmatprep.subr.bf16.mxu0 %v2933_v15 }
 0xb7a   :  { %v876_v24 = vpop.f32.mrb[24].mxu0 }
 0xb7b   :  { %v883_v25 = vadd.f32 %v876_v24, %v712_v5  ;;  %v2615_v26 = vpop.f32.mrb[25].mxu0 }
 0xb7c   :  { %v879_v27 = vpop.f32.mrb[26].mxu0 }
 0xb7d   :  { %v891_v28 = vadd.f32 %v2387_v23, %v883_v25  ;;  %v884_v29 = vadd.f32 %v879_v27, %v713_v8  ;;  %v2616_v30 = vpop.f32.mrb[27].mxu0  ;;  %v2767_v8 = vld [vmem:[%s3550_s12 + $0x10] sm:$0xff]  }
 0xb7e   :  { %2630 = vmatpush3.bf16.msra.mxu0 %v2767_v8 }
 0xb7f   :  { %v892_v33 = vadd.f32 %v2387_v23, %v884_v29  ;;  %v893_v34 = vadd.f32 %v891_v28, %v3074_v31  ;;  %2631 = vmatprep.subr.bf16.mxu0 %v2933_v15 }
 0xb81   :  { %v895_v35 = vsel %vm65_vm0, %v893_v34, 0.0  ;;  %v894_v36 = vadd.f32 %v892_v33, %v3076_v32  ;;  %v2763_v32 = vld [vmem:[%s3548_s10] sm:$0xff]  }
 0xb82   :  { %896 = vadd.xlane.f32.xlu1 %v895_v35  ;;  %2618 = vmatpush3.bf16.msra.mxu1 %v2763_v32 }
 0xb83   :  { %v898_v37 = vsel %vm65_vm0, %v894_v36, 0.0  ;;  %2619 = vmatprep.subr.bf16.mxu1 %v2933_v15  ;;  %2632 = vmatpush3.bf16.msra.mxu0 %v2768_v9 }
 0xb84   :  { %2651 = vmatprep.subr.bf16.mxu0 %v2933_v15 }
 0xb86   :  { %899 = vadd.xlane.f32.xlu1 %v898_v37  ;;  %2620 = vmatpush3.bf16.msra.mxu1 %v2764_v50 }
 0xb87   :  { %2637 = vmatprep.subr.bf16.mxu1 %v2933_v15 }
 0xc0f   :  { %v897_v38 = vpop.xlane.xlu1 %896 }
 0xc10   :  { %v901_v39 = vmul.f32 0.03125, %v897_v38 }
 0xc12   :  { %v903_v40 = vsub.f32 %v893_v34, %v901_v39 }
 0xc13   :  { %v900_v42 = vpop.xlane.xlu1 %899 }
 0xc14   :  { %v902_v43 = vmul.f32 0.03125, %v900_v42  ;;  %v905_v44 = vmul.f32 %v903_v40, %v903_v40 }
 0xc16   :  { %v904_v45 = vsub.f32 %v894_v36, %v902_v43  ;;  %v907_v46 = vsel %vm65_vm0, %v905_v44, 0.0 }
 0xc17   :  { %908 = vadd.xlane.f32.xlu1 %v907_v46 }
 0xc18   :  { %v906_v48 = vmul.f32 %v904_v45, %v904_v45 }
 0xc1a   :  { %v910_v31 = vsel %vm65_vm0, %v906_v48, 0.0 }
 0xc1b   :  { %911 = vadd.xlane.f32.xlu1 %v910_v31 }
 0xca4   :  { %v909_v51 = vpop.xlane.xlu1 %908 }
 0xca5   :  { %v913_v52 = vmul.f32 0.03125, %v909_v51 }
 0xca7   :  { %v915_v53 = vadd.f32 1e-12, %v913_v52 }
 0xca8   :  { %v912_v54 = vpop.xlane.xlu1 %911 }
 0xca9   :  { %2815 = vrsqrt.f32 %v915_v53  ;;  %v914_v55 = vmul.f32 0.03125, %v912_v54 }
 0xcab   :  { %v916_v56 = vadd.f32 1e-12, %v914_v55 }
 0xcad   :  { %2817 = vrsqrt.f32 %v916_v56  ;;  %v2946_v56 = vmov -1.0  }
 0xcb3   :  { %v2816_v57 = vpop.eup %2815 }
 0xcb4   :  { %v919_v58 = vmul.f32 %v2816_v57, %v903_v40 }
 0xcb6   :  { %v927_v61 = vmul.f32 %v2388_v59, %v919_v58 }
 0xcb7   :  { %v2818_v60 = vpop.eup %2817 }
 0xcb8   :  { %v920_v62 = vmul.f32 %v2818_v60, %v904_v45  ;;  %v3242_v2 = vadd.f32 %v2389_v63, %v927_v61 }
 0xcba   :  { %v928_v0 = vmul.f32 %v2388_v59, %v920_v62 }
 0xcbc   :  { %v3244_v3 = vadd.f32 %v2389_v63, %v928_v0 }
 0xcbe   :  { %v937_v5 = vpack.c.bf16 %v3244_v3, %v3242_v2 }
 0xcc0   :  { %2622 = vmatmul.mubr.msk.bf16.vlgmr.msra.gmra.mrb[24].mxu1 %vm65_vm0, %v937_v5 }
 0xcc1   :  { %2641 = vmatprep.mubr.msk.bf16.mxu1 %vm2934_vm1, %v2933_v15 }
 0xd93   :  { %v993_v11 = vpop.f32.mrb[24].mxu1 }
 0xd94   :  { %v994_v12 = vadd.f32 %v2390_v10, %v993_v11  ;;  %v2623_v13 = vpop.f32.mrb[25].mxu1 }
 0xd95   :  { %v996_v14 = vpop.f32.mrb[26].mxu1 }
 0xd96   :  { %v1002_v16 = vmul.f32 0.70710677, %v994_v12  ;;  %v997_v41 = vadd.f32 %v2390_v10, %v996_v14  ;;  %v2624_v17 = vpop.f32.mrb[27].mxu1  ;;  %v1000_v0 = vmul.f32 0.5, %v994_v12  ;;  %v2394_v10 = vld [vmem:[%s3551_s13] ss:$0 sm:$0xff] }
 0xd98   :  { %v1008_v1 = vand.u32 2147483647, %v1002_v16  ;;  %v1003_v4 = vmul.f32 0.70710677, %v997_v41  ;;  %vm1004_vm5 = vcmp.ge.f32.partialorder %v1002_v16, 0.0  ;;  %v1001_v5 = vmul.f32 0.5, %v997_v41 }
 0xd99   :  { %v1006_v57 = vsel %vm1004_vm5, 1.0, %v2946_v56 }
 0xd9a   :  { %v1010_v18 = vmul.f32 0.3275911, %v1008_v1  ;;  %v1009_v19 = vand.u32 2147483647, %v1003_v4  ;;  %v1034_v23 = vsub.f32 0.0, %v1008_v1  ;;  %vm1005_vm6 = vcmp.ge.f32.partialorder %v1003_v4, 0.0 }
 0xd9b   :  { %v1007_v61 = vsel %vm1005_vm6, 1.0, %v2946_v56 }
 0xd9c   :  { %v1012_v20 = vadd.f32 1.0, %v1010_v18  ;;  %v1011_v21 = vmul.f32 0.3275911, %v1009_v19  ;;  %v1035_v24 = vsub.f32 0.0, %v1009_v19  ;;  %v1036_v26 = vmul.f32 %v1034_v23, %v1008_v1 }
 0xd9e   :  { %2819 = vrcp.f32 %v1012_v20  ;;  %v1013_v22 = vadd.f32 1.0, %v1011_v21  ;;  %v1037_v30 = vmul.f32 %v1035_v24, %v1009_v19  ;;  %v1038_v33 = vmul.f32 1.442695, %v1036_v26 }
 0xda0   :  { %2821 = vrcp.f32 %v1013_v22  ;;  %v1040_v38 = vmul.f32 1.442695, %v1037_v30 }
 0xda1   :  { %2823 = vpow2.f32 %v1038_v33 }
 0xda2   :  { %2825 = vpow2.f32 %v1040_v38 }
 0xda8   :  { %v2820_v25 = vpop.eup %2819 }
 0xda9   :  { %v1016_v27 = vmul.f32 1.0614054, %v2820_v25 }
 0xdaa   :  { %v2822_v28 = vpop.eup %2821 }
 0xdab   :  { %v1018_v29 = vadd.f32 -1.4531521, %v1016_v27  ;;  %v1017_v34 = vmul.f32 1.0614054, %v2822_v28  ;;  %v2824_v50 = vpop.eup %2823 }
 0xdac   :  { %v2826_v54 = vpop.eup %2825 }
 0xdad   :  { %v1020_v35 = vmul.f32 %v2820_v25, %v1018_v29  ;;  %v1019_v36 = vadd.f32 -1.4531521, %v1017_v34 }
 0xdaf   :  { %v1022_v37 = vadd.f32 1.4214138, %v1020_v35  ;;  %v1021_v39 = vmul.f32 %v2822_v28, %v1019_v36 }
 0xdb1   :  { %v1024_v40 = vmul.f32 %v2820_v25, %v1022_v37  ;;  %v1023_v42 = vadd.f32 1.4214138, %v1021_v39  ;;  %v2400_v39 = vld [vmem:[%s3552_s14] ss:$0 sm:$0xff] }
 0xdb3   :  { %v1026_v43 = vadd.f32 -0.28449672, %v1024_v40  ;;  %v1025_v44 = vmul.f32 %v2822_v28, %v1023_v42 }
 0xdb5   :  { %v1028_v45 = vmul.f32 %v2820_v25, %v1026_v43  ;;  %v1027_v46 = vadd.f32 -0.28449672, %v1025_v44  ;;  %v2401_v44 = vld [vmem:[%s3553_s15] ss:$0 sm:$0xff] }
 0xdb7   :  { %v1030_v48 = vadd.f32 0.2548296, %v1028_v45  ;;  %v1029_v31 = vmul.f32 %v2822_v28, %v1027_v46 }
 0xdb9   :  { %v1032_v32 = vmul.f32 %v2820_v25, %v1030_v48  ;;  %v1031_v51 = vadd.f32 0.2548296, %v1029_v31 }
 0xdbb   :  { %v1042_v52 = vmul.f32 %v2824_v50, %v1032_v32  ;;  %v1033_v53 = vmul.f32 %v2822_v28, %v1031_v51  ;;  %v2770_v28 = vld [vmem:[%s3542_s4 + $0x18] sm:$0xff]   ;;  %v2430_v32 = vld [vmem:[%s3543_s5 + $0x1] ss:$0 sm:$0xff] }
 0xdbd   :  { %v1044_v55 = vsub.f32 1.0, %v1042_v52  ;;  %v1043_v58 = vmul.f32 %v2826_v54, %v1033_v53 }
 0xdbf   :  { %v1046_v59 = vmul.f32 %v1044_v55, %v1006_v57  ;;  %v1045_v60 = vsub.f32 1.0, %v1043_v58 }
 0xdc1   :  { %v1048_v62 = vadd.f32 1.0, %v1046_v59  ;;  %v1047_v63 = vmul.f32 %v1045_v60, %v1007_v61 }
 0xdc3   :  { %v1049_v6 = vadd.f32 1.0, %v1047_v63  ;;  %v1050_v7 = vmul.f32 %v1048_v62, %v1000_v0 }
 0xdc5   :  { %v1051_v8 = vmul.f32 %v1049_v6, %v1001_v5 }
 0xdc7   :  { %v1052_v9 = vpack.c.bf16 %v1051_v8, %v1050_v7 }
 0xdc9   :  { %2634 = vmatmul.mubr.msk.bf16.vlgmr.msra.gmra.mrb[28].mxu0 %vm1083_vm7, %v1052_v9 }
 0xdca   :  { %2653 = vmatprep.mubr.msk.bf16.mxu0 %vm2934_vm1, %v2933_v15 }
 0xe9c   :  { %v1121_v11 = vpop.f32.mrb[28].mxu0 }
 0xe9d   :  { %v1122_v13 = vadd.f32 %v2394_v10, %v1121_v11  ;;  %v2635_v14 = vpop.f32.mrb[29].mxu0 }
 0xe9e   :  { %v1124_v16 = vpop.f32.mrb[30].mxu0 }
 0xe9f   :  { %v1125_v12 = vadd.f32 %v2394_v10, %v1124_v16  ;;  %v2636_v41 = vpop.f32.mrb[31].mxu0  ;;  %v1128_v17 = vadd.f32 %v1122_v13, %v3242_v2 }
 0xea1   :  { %v1130_v1 = vsel %vm65_vm0, %v1128_v17, 0.0  ;;  %v1129_v4 = vadd.f32 %v1125_v12, %v3244_v3  ;;  %v2769_v3 = vld [vmem:[%s3542_s4 + $0x10] sm:$0xff]  }
 0xea2   :  { %1131 = vadd.xlane.f32.xlu1 %v1130_v1  ;;  %2638 = vmatpush3.bf16.msra.mxu1 %v2769_v3 }
 0xea3   :  { %v1133_v18 = vsel %vm65_vm0, %v1129_v4, 0.0  ;;  %2639 = vmatprep.subr.bf16.mxu1 %v2933_v15 }
 0xea6   :  { %1134 = vadd.xlane.f32.xlu1 %v1133_v18  ;;  %2640 = vmatpush3.bf16.msra.mxu1 %v2770_v28 }
 0xea7   :  { %2645 = vmatprep.subr.bf16.mxu1 %v2933_v15 }
 0xf2f   :  { %v1132_v19 = vpop.xlane.xlu1 %1131 }
 0xf30   :  { %v1136_v20 = vmul.f32 0.03125, %v1132_v19 }
 0xf32   :  { %v1138_v21 = vsub.f32 %v1128_v17, %v1136_v20 }
 0xf33   :  { %v1135_v22 = vpop.xlane.xlu1 %1134 }
 0xf34   :  { %v1137_v23 = vmul.f32 0.03125, %v1135_v22  ;;  %v1140_v24 = vmul.f32 %v1138_v21, %v1138_v21 }
 0xf36   :  { %v1139_v25 = vsub.f32 %v1129_v4, %v1137_v23  ;;  %v1142_v26 = vsel %vm65_vm0, %v1140_v24, 0.0 }
 0xf37   :  { %1143 = vadd.xlane.f32.xlu0 %v1142_v26 }
 0xf38   :  { %v1141_v27 = vmul.f32 %v1139_v25, %v1139_v25 }
 0xf3a   :  { %v1145_v2 = vsel %vm65_vm0, %v1141_v27, 0.0 }
 0xf3b   :  { %1146 = vadd.xlane.f32.xlu1 %v1145_v2 }
 0xfc4   :  { %v1144_v29 = vpop.xlane.xlu0 %1143 }
 0xfc5   :  { %v1148_v30 = vmul.f32 0.03125, %v1144_v29 }
 0xfc7   :  { %v1150_v33 = vadd.f32 1e-12, %v1148_v30 }
 0xfc8   :  { %v1147_v34 = vpop.xlane.xlu1 %1146 }
 0xfc9   :  { %2827 = vrsqrt.f32 %v1150_v33  ;;  %v1149_v35 = vmul.f32 0.03125, %v1147_v34 }
 0xfcb   :  { %v1151_v36 = vadd.f32 1e-12, %v1149_v35 }
 0xfcd   :  { %2829 = vrsqrt.f32 %v1151_v36 }
 0xfd3   :  { %v2828_v37 = vpop.eup %2827 }
 0xfd4   :  { %v1154_v38 = vmul.f32 %v2828_v37, %v1138_v21 }
 0xfd6   :  { %v1162_v42 = vmul.f32 %v2400_v39, %v1154_v38 }
 0xfd7   :  { %v2830_v40 = vpop.eup %2829 }
 0xfd8   :  { %v1155_v43 = vmul.f32 %v2830_v40, %v1139_v25  ;;  %v3298_v46 = vadd.f32 %v2401_v44, %v1162_v42 }
 0xfda   :  { %v1163_v45 = vmul.f32 %v2400_v39, %v1155_v43 }
 0xfdc   :  { %v3300_v48 = vadd.f32 %v2401_v44, %v1163_v45 }
 0xfde   :  { %v1212_v31 = vpack.c.bf16 %v3300_v48, %v3298_v46 }
 0xfe0   :  { %2642 = vmatmul.mubr.msk.bf16.vlgmr.msra.gmra.mrb[28].mxu1 %vm65_vm0, %v1212_v31 }
 0xfe1   :  { %2647 = vmatprep.mubr.msk.bf16.mxu1 %vm2934_vm1, %v2933_v15 }
0x10b3   :  { %v1268_v50 = vpop.f32.mrb[28].mxu1 }
0x10b4   :  { %v2643_v51 = vpop.f32.mrb[29].mxu1  ;;  %v1269_v53 = vadd.f32 %v2430_v32, %v1268_v50 }
0x10b5   :  { %v1271_v52 = vpop.f32.mrb[30].mxu1 }
0x10b6   :  { %v1272_v54 = vadd.f32 %v2430_v32, %v1271_v52  ;;  %v2644_v55 = vpop.f32.mrb[31].mxu1 }
0x10b8   :  { %v3310_v57 = vpack.c.bf16 %v1272_v54, %v1269_v53  ;;  %v2407_v54 = vld [vmem:[%s3544_s6 + $0x10] sm:$0xf] }
0x10b9   :  { %v1570_v55 = vsel %vm451_vm4, %v2407_v54, 0 }
0x10ba   :  { %1277 = vrot.lane.b32.xlu1 %v3310_v57, %s2936_s28 }
0x10be   :  { %1399 = vrot.lane.b32.xlu1 %v3310_v57, %s2935_s3 }
0x10c2   :  { %1397 = vrot.lane.b32.xlu1 %v3310_v57, %s2937_s29 }
0x112c   :  { %v1278_v58 = vpop.permute.xlu1 %1277 }
0x112d   :  { %v1283_v59 = vsel %vm206_vm2, %v1278_v58, 0  ;;  %v2408_v58 = vld [vmem:[%s3544_s6 + $0x14] sm:$0xf] }
0x112e   :  { %2646 = vmatpush3.bf16.xpose.msra.mxu1 %v1283_v59  ;;  %v1523_v59 = vsel %vm451_vm4, %v2408_v58, 0 }
0x112f   :  { %2657 = vmatprep.subr.bf16.mxu1 %v2933_v15 }
0x1130   :  { %v1400_v60 = vpop.permute.xlu1 %1399 }
0x1131   :  { %v1405_v61 = vsel %vm206_vm2, %v1400_v60, 0 }
0x1134   :  { %v1398_v62 = vpop.permute.xlu1 %1397 }
0x1135   :  { %2648 = vmatmul.mubr.msk.bf16.vlgmr.msra.gmra.mrb[32].mxu1 %vm206_vm2, %v3310_v57 }
0x1136   :  { %2658 = vmatpush3.bf16.xpose.msra.mxu1 %v1405_v61  ;;  %2659 = vmatprep.mubr.msk.bf16.mxu1 %vm2934_vm1, %v2933_v15 }
0x1137   :  { %2669 = vmatprep.subr.bf16.mxu1 %v2933_v15 }
0x113d   :  { %2660 = vmatmul.mubr.msk.bf16.vlgmr.msra.gmra.mrb[36].mxu1 %vm206_vm2, %v1398_v62 }
0x113e   :  { %2671 = vmatprep.mubr.msk.bf16.mxu1 %vm2934_vm1, %v2933_v15  ;;  %2670 = vmatpush3.bf16.msra.mxu1 %v1523_v59 }
0x113f   :  { %2681 = vmatprep.subr.bf16.mxu1 %v2933_v15 }
0x1208   :  { %v1319_v63 = vpop.f32.mrb[32].mxu1 }
0x1209   :  { %v1320_v0 = vadd.f32 %v1319_v63, %v3108_v47  ;;  %v2649_v5 = vpop.f32.mrb[33].mxu1 }
0x120a   :  { %v1322_v6 = vpop.f32.mrb[34].mxu1 }
0x120b   :  { %v1323_v7 = vadd.f32 %v1322_v6, %v3113_v49  ;;  %v2650_v8 = vpop.f32.mrb[35].mxu1  ;;  %v1326_v9 = vsel %vm254_vm3, %v1320_v0, -inf }
0x120c   :  { %1327 = vmax.xlane.f32.xlu0 %v1326_v9 }
0x120d   :  { %v1329_v10 = vsel %vm254_vm3, %v1323_v7, -inf }
0x120e   :  { %1330 = vmax.xlane.f32.xlu1 %v1329_v10 }
0x1210   :  { %v1441_v11 = vpop.f32.mrb[36].mxu1 }
0x1211   :  { %v1442_v13 = vadd.f32 %v1441_v11, %v3108_v47  ;;  %v2661_v14 = vpop.f32.mrb[37].mxu1 }
0x1212   :  { %v1444_v16 = vpop.f32.mrb[38].mxu1 }
0x1213   :  { %v1445_v12 = vadd.f32 %v1444_v16, %v3113_v49  ;;  %v2662_v41 = vpop.f32.mrb[39].mxu1  ;;  %v1448_v17 = vsel %vm254_vm3, %v1442_v13, -inf }
0x1214   :  { %1449 = vmax.xlane.f32.xlu0 %v1448_v17 }
0x1215   :  { %v1451_v1 = vsel %vm254_vm3, %v1445_v12, -inf }
0x1218   :  { %1452 = vmax.xlane.f32.xlu0 %v1451_v1 }
0x121f   :  { %1471 = vrot.lane.b32.xlu1 %v3310_v57, %s2941_s23 }
0x1223   :  { %1613 = vrot.lane.b32.xlu1 %v3310_v57, %s2940_s2 }
0x1299   :  { %v1328_v4 = vpop.xlane.xlu0 %1327 }
0x129a   :  { %v1332_v18 = vsub.f32 %v1320_v0, %v1328_v4 }
0x129b   :  { %v1331_v47 = vpop.xlane.xlu1 %1330 }
0x129c   :  { %v1334_v19 = vmul.f32 1.442695, %v1332_v18  ;;  %v1333_v20 = vsub.f32 %v1323_v7, %v1331_v47 }
0x129e   :  { %2831 = vpow2.f32 %v1334_v19  ;;  %v1336_v49 = vmul.f32 1.442695, %v1333_v20 }
0x129f   :  { %v1472_v31 = vpop.permute.xlu1 %1471 }
0x12a0   :  { %2833 = vpow2.f32 %v1336_v49  ;;  %v2883_v49 = vld [vmem:[%s3567_s19] sm:$0xff] }
0x12a1   :  { %v1450_v21 = vpop.xlane.xlu0 %1449 }
0x12a2   :  { %v1454_v22 = vsub.f32 %v1442_v13, %v1450_v21 }
0x12a3   :  { %v1614_v13 = vpop.permute.xlu1 %1613 }
0x12a4   :  { %v1456_v23 = vmul.f32 1.442695, %v1454_v22 }
0x12a5   :  { %v1453_v24 = vpop.xlane.xlu0 %1452 }
0x12a6   :  { %2835 = vpow2.f32 %v1456_v23  ;;  %v1455_v25 = vsub.f32 %v1445_v12, %v1453_v24  ;;  %v2884_v24 = vld [vmem:[%s3567_s19 + $0x8] sm:$0xff]  ;;  %s3569_s19 = smov 48  }
0x12a8   :  { %v2832_v26 = vpop.eup %2831  ;;  %v1458_v27 = vmul.f32 1.442695, %v1455_v25 }
0x12a9   :  { %v1338_v2 = vsel %vm254_vm3, %v2832_v26, 0.0 }
0x12aa   :  { %v2834_v3 = vpop.eup %2833  ;;  %2837 = vpow2.f32 %v1458_v27  ;;  %1339 = vadd.xlane.f32.xlu0 %v1338_v2 }
0x12ab   :  { %v1341_v28 = vsel %vm254_vm3, %v2834_v3, 0.0 }
0x12ae   :  { %1342 = vadd.xlane.f32.xlu0 %v1341_v28 }
0x12b0   :  { %v2836_v29 = vpop.eup %2835 }
0x12b1   :  { %v1460_v30 = vsel %vm254_vm3, %v2836_v29, 0.0 }
0x12b2   :  { %1461 = vadd.xlane.f32.xlu0 %v1460_v30 }
0x12b4   :  { %v2838_v33 = vpop.eup %2837 }
0x12b5   :  { %v1463_v34 = vsel %vm254_vm3, %v2838_v33, 0.0 }
0x12b6   :  { %1464 = vadd.xlane.f32.xlu0 %v1463_v34 }
0x12cc   :  { %1349 = vrot.lane.b32.xlu0 %v3310_v57, %s2938_s21 }
0x12d0   :  { %1615 = vrot.lane.b32.xlu0 %v3310_v57, %s2939_s22 }
0x1337   :  { %v1340_v35 = vpop.xlane.xlu0 %1339 }
0x1338   :  { %2839 = vrcp.f32 %v1340_v35 }
0x133b   :  { %v1343_v36 = vpop.xlane.xlu0 %1342 }
0x133c   :  { %2841 = vrcp.f32 %v1343_v36 }
0x133f   :  { %v1462_v37 = vpop.xlane.xlu0 %1461 }
0x1340   :  { %2843 = vrcp.f32 %v1462_v37 }
0x1342   :  { %v2840_v39 = vpop.eup %2839 }
0x1343   :  { %v1465_v38 = vpop.xlane.xlu0 %1464  ;;  %v1346_v42 = vmul.f32 %v2840_v39, %v2832_v26 }
0x1344   :  { %2845 = vrcp.f32 %v1465_v38 }
0x1346   :  { %v2842_v40 = vpop.eup %2841 }
0x1347   :  { %v1347_v43 = vmul.f32 %v2842_v40, %v2834_v3  ;;  %v1350_v44 = vpop.permute.xlu0 %1349 }
0x1348   :  { %2652 = vmatpush3.bf16.msra.mxu0 %v1350_v44 }
0x1349   :  { %v1348_v45 = vpack.c.bf16 %v1347_v43, %v1346_v42  ;;  %2663 = vmatprep.subr.bf16.mxu0 %v2933_v15 }
0x134a   :  { %v2844_v32 = vpop.eup %2843 }
0x134b   :  { %2654 = vmatmul.mubr.msk.bf16.vlgmr.msra.gmra.mrb[32].mxu0 %vm254_vm3, %v1348_v45  ;;  %v1468_v51 = vmul.f32 %v2844_v32, %v2836_v29  ;;  %v1616_v7 = vpop.permute.xlu0 %1615 }
0x134c   :  { %2664 = vmatpush3.bf16.msra.mxu0 %v1472_v31  ;;  %2665 = vmatprep.mubr.msk.bf16.mxu0 %vm2934_vm1, %v2933_v15  ;;  %v1621_v11 = vsel %vm206_vm2, %v1616_v7, 0 }
0x134d   :  { %2675 = vmatprep.subr.bf16.mxu0 %v2933_v15 }
0x134e   :  { %v2846_v50 = vpop.eup %2845 }
0x134f   :  { %v1469_v52 = vmul.f32 %v2846_v50, %v2838_v33 }
0x1351   :  { %v1470_v53 = vpack.c.bf16 %v1469_v52, %v1468_v51 }
0x1353   :  { %2666 = vmatmul.mubr.msk.bf16.vlgmr.msra.gmra.mrb[36].mxu0 %vm254_vm3, %v1470_v53  ;;  %v2409_v53 = vld [vmem:[%s3544_s6 + $0x18] sm:$0xf] }
0x1354   :  { %2677 = vmatprep.mubr.msk.bf16.mxu0 %vm2934_vm1, %v2933_v15  ;;  %2676 = vmatpush3.bf16.msra.mxu0 %v1570_v55  ;;  %v1739_v54 = vsel %vm451_vm4, %v2409_v53, 0 }
0x1355   :  { %2687 = vmatprep.subr.bf16.mxu0 %v2933_v15 }
0x141e   :  { %v1389_v60 = vpop.f32.mrb[32].mxu0 }
0x141f   :  { %v2655_v61 = vpop.f32.mrb[33].mxu0 }
0x1420   :  { %v1392_v62 = vpop.f32.mrb[34].mxu0 }
0x1421   :  { %v1396_v63 = vpack.c.bf16 %v1392_v62, %v1389_v60  ;;  %v2656_v0 = vpop.f32.mrb[35].mxu0 }
0x1423   :  { %2678 = vmatmul.mubr.msk.bf16.vlgmr.msra.gmra.mrb[40].mxu0 %vm206_vm2, %v1396_v63 }
0x1424   :  { %2689 = vmatprep.mubr.msk.bf16.mxu0 %vm2934_vm1, %v2933_v15 }
0x1426   :  { %v1511_v5 = vpop.f32.mrb[36].mxu0 }
0x1427   :  { %v2667_v6 = vpop.f32.mrb[37].mxu0 }
0x1428   :  { %v1514_v8 = vpop.f32.mrb[38].mxu0 }
0x1429   :  { %v1518_v9 = vpack.c.bf16 %v1514_v8, %v1511_v5  ;;  %v2668_v10 = vpop.f32.mrb[39].mxu0 }
0x142b   :  { %2672 = vmatmul.mubr.msk.bf16.vlgmr.msra.gmra.mrb[40].mxu1 %vm206_vm2, %v1518_v9 }
0x142c   :  { %2682 = vmatpush3.bf16.xpose.msra.mxu1 %v1621_v11  ;;  %2683 = vmatprep.mubr.msk.bf16.mxu1 %vm2934_vm1, %v2933_v15 }
0x142d   :  { %2693 = vmatprep.subr.bf16.mxu1 %v2933_v15 }
0x1433   :  { %2684 = vmatmul.mubr.msk.bf16.vlgmr.msra.gmra.mrb[44].mxu1 %vm206_vm2, %v1614_v13 }
0x1434   :  { %2695 = vmatprep.mubr.msk.bf16.mxu1 %vm2934_vm1, %v2933_v15  ;;  %2694 = vmatpush3.bf16.msra.mxu1 %v1739_v54 }
0x1435   :  { %2705 = vmatprep.subr.bf16.mxu1 %v2933_v15 }
0x14f6   :  { %v1606_v14 = vpop.f32.mrb[40].mxu0 }
0x14f7   :  { %v2679_v16 = vpop.f32.mrb[41].mxu0 }
0x14f8   :  { %v1609_v12 = vpop.f32.mrb[42].mxu0 }
0x14f9   :  { %v2680_v41 = vpop.f32.mrb[43].mxu0 }
0x14fe   :  { %v1559_v17 = vpop.f32.mrb[40].mxu1 }
0x14ff   :  { %v3378_v1 = vadd.f32 %v1606_v14, %v1559_v17  ;;  %v2673_v4 = vpop.f32.mrb[41].mxu1 }
0x1500   :  { %v1562_v18 = vpop.f32.mrb[42].mxu1 }
0x1501   :  { %v3380_v47 = vadd.f32 %v1609_v12, %v1562_v18  ;;  %v2674_v19 = vpop.f32.mrb[43].mxu1 }
0x1506   :  { %v1657_v20 = vpop.f32.mrb[44].mxu1 }
0x1507   :  { %v1658_v21 = vadd.f32 %v2883_v49, %v1657_v20  ;;  %v2685_v22 = vpop.f32.mrb[45].mxu1 }
0x1508   :  { %v1660_v23 = vpop.f32.mrb[46].mxu1 }
0x1509   :  { %v1661_v25 = vadd.f32 %v2884_v24, %v1660_v23  ;;  %v2686_v26 = vpop.f32.mrb[47].mxu1  ;;  %v1664_v27 = vsel %vm254_vm3, %v1658_v21, -inf }
0x150a   :  { %1665 = vmax.xlane.f32.xlu0 %v1664_v27 }
0x150b   :  { %v1667_v2 = vsel %vm254_vm3, %v1661_v25, -inf }
0x150c   :  { %1668 = vmax.xlane.f32.xlu1 %v1667_v2 }
0x151d   :  { %1786 = vrot.lane.b32.xlu1 %v3310_v57, %s2944_s1 }
0x1521   :  { %1784 = vrot.lane.b32.xlu1 %v3310_v57, %s3568_s26 }
0x1597   :  { %v1666_v3 = vpop.xlane.xlu0 %1665 }
0x1598   :  { %v1670_v28 = vsub.f32 %v1658_v21, %v1666_v3 }
0x1599   :  { %v1669_v29 = vpop.xlane.xlu1 %1668 }
0x159a   :  { %v1672_v30 = vmul.f32 1.442695, %v1670_v28  ;;  %v1671_v33 = vsub.f32 %v1661_v25, %v1669_v29 }
0x159c   :  { %2847 = vpow2.f32 %v1672_v30  ;;  %v1674_v34 = vmul.f32 1.442695, %v1671_v33 }
0x159d   :  { %v1787_v32 = vpop.permute.xlu1 %1786 }
0x159e   :  { %2849 = vpow2.f32 %v1674_v34  ;;  %v1792_v51 = vsel %vm206_vm2, %v1787_v32, 0 }
0x15a1   :  { %v1785_v52 = vpop.permute.xlu1 %1784 }
0x15a6   :  { %v2848_v35 = vpop.eup %2847 }
0x15a7   :  { %v1676_v36 = vsel %vm254_vm3, %v2848_v35, 0.0 }
0x15a8   :  { %v2850_v37 = vpop.eup %2849  ;;  %1677 = vadd.xlane.f32.xlu0 %v1676_v36  ;;  %v2446_v36 = vld [vmem:[%s3545_s7 + $0x1] ss:$0 sm:$0xff] }
0x15a9   :  { %v1679_v38 = vsel %vm254_vm3, %v2850_v37, 0.0 }
0x15ac   :  { %1680 = vadd.xlane.f32.xlu0 %v1679_v38 }
0x15c2   :  { %1687 = vrot.lane.b32.xlu0 %v3310_v57, %s3569_s19 }
0x1635   :  { %v1678_v39 = vpop.xlane.xlu0 %1677 }
0x1636   :  { %2851 = vrcp.f32 %v1678_v39 }
0x1639   :  { %v1681_v40 = vpop.xlane.xlu0 %1680 }
0x163a   :  { %2853 = vrcp.f32 %v1681_v40 }
0x163d   :  { %v1688_v42 = vpop.permute.xlu0 %1687 }
0x163e   :  { %2688 = vmatpush3.bf16.msra.mxu0 %v1688_v42 }
0x163f   :  { %2699 = vmatprep.subr.bf16.mxu0 %v2933_v15 }
0x1640   :  { %v2852_v43 = vpop.eup %2851 }
0x1641   :  { %v1684_v45 = vmul.f32 %v2852_v43, %v2848_v35 }
0x1644   :  { %v2854_v44 = vpop.eup %2853 }
0x1645   :  { %v1685_v31 = vmul.f32 %v2854_v44, %v2850_v37 }
0x1647   :  { %v1686_v50 = vpack.c.bf16 %v1685_v31, %v1684_v45 }
0x1649   :  { %2690 = vmatmul.mubr.msk.bf16.vlgmr.msra.gmra.mrb[44].mxu0 %vm254_vm3, %v1686_v50 }
0x164a   :  { %2700 = vmatpush3.bf16.xpose.msra.mxu0 %v1792_v51  ;;  %2701 = vmatprep.mubr.msk.bf16.mxu0 %vm2934_vm1, %v2933_v15 }
0x164b   :  { %2711 = vmatprep.subr.bf16.mxu0 %v2933_v15 }
0x1651   :  { %2702 = vmatmul.mubr.msk.bf16.vlgmr.msra.gmra.mrb[48].mxu0 %vm206_vm2, %v1785_v52 }
0x1652   :  { %2713 = vmatprep.mubr.msk.bf16.mxu0 %vm2934_vm1, %v2933_v15 }
0x171c   :  { %v1727_v55 = vpop.f32.mrb[44].mxu0 }
0x171d   :  { %v2691_v58 = vpop.f32.mrb[45].mxu0 }
0x171e   :  { %v1730_v59 = vpop.f32.mrb[46].mxu0 }
0x171f   :  { %v1734_v60 = vpack.c.bf16 %v1730_v59, %v1727_v55  ;;  %v2692_v61 = vpop.f32.mrb[47].mxu0 }
0x1721   :  { %2696 = vmatmul.mubr.msk.bf16.vlgmr.msra.gmra.mrb[48].mxu1 %vm206_vm2, %v1734_v60 }
0x1722   :  { %2707 = vmatprep.mubr.msk.bf16.mxu1 %vm2934_vm1, %v2933_v15 }
0x1724   :  { %v1828_v62 = vpop.f32.mrb[48].mxu0 }
0x1725   :  { %v1829_v63 = vadd.f32 %v2883_v49, %v1828_v62  ;;  %v2703_v0 = vpop.f32.mrb[49].mxu0 }
0x1726   :  { %v1831_v5 = vpop.f32.mrb[50].mxu0 }
0x1727   :  { %v1832_v6 = vadd.f32 %v2884_v24, %v1831_v5  ;;  %v2704_v7 = vpop.f32.mrb[51].mxu0  ;;  %v1835_v8 = vsel %vm254_vm3, %v1829_v63, -inf }
0x1728   :  { %1836 = vmax.xlane.f32.xlu1 %v1835_v8 }
0x1729   :  { %v1838_v9 = vsel %vm254_vm3, %v1832_v6, -inf }
0x172a   :  { %1839 = vmax.xlane.f32.xlu0 %v1838_v9 }
0x1739   :  { %1858 = vrot.lane.b32.xlu1 %v3310_v57, %s3570_s20 }
0x17b5   :  { %v1837_v10 = vpop.xlane.xlu1 %1836 }
0x17b6   :  { %v1841_v11 = vsub.f32 %v1829_v63, %v1837_v10  ;;  %v2772_v63 = vld [vmem:[%s3548_s10 + $0x18] sm:$0xff]  }
0x17b7   :  { %v1840_v13 = vpop.xlane.xlu0 %1839 }
0x17b8   :  { %v1843_v14 = vmul.f32 1.442695, %v1841_v11  ;;  %v1842_v16 = vsub.f32 %v1832_v6, %v1840_v13  ;;  %v2447_v13 = vld [vmem:[%s3546_s8 + $0x1] ss:$0 sm:$0xff] }
0x17b9   :  { %v1859_v12 = vpop.permute.xlu1 %1858 }
0x17ba   :  { %2855 = vpow2.f32 %v1843_v14  ;;  %v1845_v41 = vmul.f32 1.442695, %v1842_v16  ;;  %2706 = vmatpush3.bf16.msra.mxu1 %v1859_v12 }
0x17bb   :  { %2717 = vmatprep.subr.bf16.mxu1 %v2933_v15 }
0x17bc   :  { %2857 = vpow2.f32 %v1845_v41  ;;  %v2448_v41 = vld [vmem:[%s3547_s9 + $0x1] ss:$0 sm:$0xff] }
0x17c4   :  { %v2856_v17 = vpop.eup %2855 }
0x17c5   :  { %v1847_v4 = vsel %vm254_vm3, %v2856_v17, 0.0 }
0x17c6   :  { %v2858_v18 = vpop.eup %2857  ;;  %1848 = vadd.xlane.f32.xlu0 %v1847_v4 }
0x17c7   :  { %v1850_v19 = vsel %vm254_vm3, %v2858_v18, 0.0 }
0x17ca   :  { %1851 = vadd.xlane.f32.xlu0 %v1850_v19 }
0x17f4   :  { %v1775_v57 = vpop.f32.mrb[48].mxu1 }
0x17f5   :  { %v1782_v20 = vadd.f32 %v1775_v57, %v3378_v1  ;;  %v2697_v49 = vpop.f32.mrb[49].mxu1  ;;  %v2410_v1 = vld [vmem:[%s3544_s6 + $0x1c] sm:$0xf]  ;;  %v2773_v57 = vld [vmem:[%s3550_s12 + $0x20] sm:$0xff]  }
0x17f6   :  { %v1778_v21 = vpop.f32.mrb[50].mxu1  ;;  %v2775_v49 = vld [vmem:[%s3550_s12 + $0x30] sm:$0xff]  }
0x17f7   :  { %v1783_v22 = vadd.f32 %v1778_v21, %v3380_v47  ;;  %v2698_v23 = vpop.f32.mrb[51].mxu1  ;;  %v1910_v47 = vsel %vm451_vm4, %v2410_v1, 0  ;;  %v2776_v21 = vld [vmem:[%s3550_s12 + $0x38] sm:$0xff]  }
0x17f8   :  { %2712 = vmatpush3.bf16.msra.mxu0 %v1910_v47 }
0x17f9   :  { %2725 = vmatprep.subr.bf16.mxu0 %v2933_v15 }
0x1853   :  { %v1849_v24 = vpop.xlane.xlu0 %1848 }
0x1854   :  { %2859 = vrcp.f32 %v1849_v24 }
0x1857   :  { %v1852_v25 = vpop.xlane.xlu0 %1851 }
0x1858   :  { %2861 = vrcp.f32 %v1852_v25 }
0x185e   :  { %v2860_v26 = vpop.eup %2859 }
0x185f   :  { %v1855_v2 = vmul.f32 %v2860_v26, %v2856_v17 }
0x1862   :  { %v2862_v27 = vpop.eup %2861 }
0x1863   :  { %v1856_v3 = vmul.f32 %v2862_v27, %v2858_v18 }
0x1865   :  { %v1857_v28 = vpack.c.bf16 %v1856_v3, %v1855_v2 }
0x1867   :  { %2708 = vmatmul.mubr.msk.bf16.vlgmr.msra.gmra.mrb[52].mxu1 %vm254_vm3, %v1857_v28 }
0x1868   :  { %2721 = vmatprep.mubr.msk.bf16.mxu1 %vm2934_vm1, %v2933_v15 }
0x193a   :  { %v1898_v29 = vpop.f32.mrb[52].mxu1 }
0x193b   :  { %v2709_v30 = vpop.f32.mrb[53].mxu1 }
0x193c   :  { %v1901_v33 = vpop.f32.mrb[54].mxu1 }
0x193d   :  { %v1905_v34 = vpack.c.bf16 %v1901_v33, %v1898_v29  ;;  %v2710_v35 = vpop.f32.mrb[55].mxu1 }
0x193f   :  { %2714 = vmatmul.mubr.msk.bf16.vlgmr.msra.gmra.mrb[52].mxu0 %vm206_vm2, %v1905_v34 }
0x1940   :  { %2733 = vmatprep.mubr.msk.bf16.mxu0 %vm2934_vm1, %v2933_v15  ;;  %2726 = vmatpush3.bf16.msra.mxu0 %v2773_v57 }
0x1941   :  { %2727 = vmatprep.subr.bf16.mxu0 %v2933_v15 }
0x1a12   :  { %v1946_v37 = vpop.f32.mrb[52].mxu0 }
0x1a13   :  { %v1953_v38 = vadd.f32 %v1946_v37, %v1782_v20  ;;  %v2715_v39 = vpop.f32.mrb[53].mxu0  ;;  %v2774_v20 = vld [vmem:[%s3550_s12 + $0x28] sm:$0xff]  }
0x1a14   :  { %v1949_v40 = vpop.f32.mrb[54].mxu0  ;;  %2728 = vmatpush3.bf16.msra.mxu0 %v2774_v20 }
0x1a15   :  { %v1961_v42 = vadd.f32 %v2446_v36, %v1953_v38  ;;  %v1954_v43 = vadd.f32 %v1949_v40, %v1783_v22  ;;  %v2716_v44 = vpop.f32.mrb[55].mxu0  ;;  %2729 = vmatprep.subr.bf16.mxu0 %v2933_v15  ;;  %v2449_v22 = vld [vmem:[%s3549_s11 + $0x1] ss:$0 sm:$0xff] }
0x1a17   :  { %v1962_v45 = vadd.f32 %v2446_v36, %v1954_v43  ;;  %v1963_v31 = vadd.f32 %v1961_v42, %v3298_v46 }
0x1a18   :  { %2730 = vmatpush3.bf16.msra.mxu0 %v2775_v49  ;;  %v2453_v49 = vld [vmem:[%s3551_s13 + $0x1] ss:$0 sm:$0xff] }
0x1a19   :  { %v1965_v32 = vsel %vm65_vm0, %v1963_v31, 0.0  ;;  %v1964_v50 = vadd.f32 %v1962_v45, %v3300_v48  ;;  %v2771_v48 = vld [vmem:[%s3548_s10 + $0x10] sm:$0xff]   ;;  %2731 = vmatprep.subr.bf16.mxu0 %v2933_v15 }
0x1a1a   :  { %1966 = vadd.xlane.f32.xlu0 %v1965_v32  ;;  %2718 = vmatpush3.bf16.msra.mxu1 %v2771_v48 }
0x1a1b   :  { %v1968_v51 = vsel %vm65_vm0, %v1964_v50, 0.0  ;;  %2719 = vmatprep.subr.bf16.mxu1 %v2933_v15 }
0x1a1c   :  { %2732 = vmatpush3.bf16.msra.mxu0 %v2776_v21 }
0x1a1e   :  { %1969 = vadd.xlane.f32.xlu0 %v1968_v51  ;;  %2720 = vmatpush3.bf16.msra.mxu1 %v2772_v63 }
0x1a1f   :  { %2737 = vmatprep.subr.bf16.mxu1 %v2933_v15 }
0x1aa7   :  { %v1967_v52 = vpop.xlane.xlu0 %1966 }
0x1aa8   :  { %v1971_v53 = vmul.f32 0.03125, %v1967_v52 }
0x1aaa   :  { %v1973_v54 = vsub.f32 %v1963_v31, %v1971_v53 }
0x1aab   :  { %v1970_v55 = vpop.xlane.xlu0 %1969 }
0x1aac   :  { %v1972_v58 = vmul.f32 0.03125, %v1970_v55  ;;  %v1975_v59 = vmul.f32 %v1973_v54, %v1973_v54 }
0x1aae   :  { %v1974_v60 = vsub.f32 %v1964_v50, %v1972_v58  ;;  %v1977_v61 = vsel %vm65_vm0, %v1975_v59, 0.0 }
0x1aaf   :  { %1978 = vadd.xlane.f32.xlu0 %v1977_v61 }
0x1ab0   :  { %v1976_v62 = vmul.f32 %v1974_v60, %v1974_v60 }
0x1ab2   :  { %v1980_v46 = vsel %vm65_vm0, %v1976_v62, 0.0 }
0x1ab3   :  { %1981 = vadd.xlane.f32.xlu0 %v1980_v46 }
0x1b3c   :  { %v1979_v0 = vpop.xlane.xlu0 %1978 }
0x1b3d   :  { %v1983_v5 = vmul.f32 0.03125, %v1979_v0 }
0x1b3f   :  { %v1985_v6 = vadd.f32 1e-12, %v1983_v5 }
0x1b40   :  { %v1982_v7 = vpop.xlane.xlu0 %1981 }
0x1b41   :  { %2863 = vrsqrt.f32 %v1985_v6  ;;  %v1984_v8 = vmul.f32 0.03125, %v1982_v7 }
0x1b43   :  { %v1986_v9 = vadd.f32 1e-12, %v1984_v8 }
0x1b45   :  { %2865 = vrsqrt.f32 %v1986_v9 }
0x1b4b   :  { %v2864_v10 = vpop.eup %2863 }
0x1b4c   :  { %v1989_v11 = vmul.f32 %v2864_v10, %v1973_v54 }
0x1b4e   :  { %v1997_v16 = vmul.f32 %v2447_v13, %v1989_v11 }
0x1b4f   :  { %v2866_v14 = vpop.eup %2865 }
0x1b50   :  { %v1990_v12 = vmul.f32 %v2866_v14, %v1974_v60  ;;  %v3458_v4 = vadd.f32 %v2448_v41, %v1997_v16 }
0x1b52   :  { %v1998_v17 = vmul.f32 %v2447_v13, %v1990_v12 }
0x1b54   :  { %v3460_v18 = vadd.f32 %v2448_v41, %v1998_v17 }
0x1b56   :  { %v2007_v19 = vpack.c.bf16 %v3460_v18, %v3458_v4 }
0x1b58   :  { %2722 = vmatmul.mubr.msk.bf16.vlgmr.msra.gmra.mrb[56].mxu1 %vm65_vm0, %v2007_v19 }
0x1b59   :  { %2741 = vmatprep.mubr.msk.bf16.mxu1 %vm2934_vm1, %v2933_v15 }
0x1c2b   :  { %v2063_v23 = vpop.f32.mrb[56].mxu1 }
0x1c2c   :  { %v2064_v24 = vadd.f32 %v2449_v22, %v2063_v23  ;;  %v2723_v25 = vpop.f32.mrb[57].mxu1 }
0x1c2d   :  { %v2066_v26 = vpop.f32.mrb[58].mxu1 }
0x1c2e   :  { %v2072_v27 = vmul.f32 0.70710677, %v2064_v24  ;;  %v2067_v2 = vadd.f32 %v2449_v22, %v2066_v26  ;;  %v2724_v3 = vpop.f32.mrb[59].mxu1  ;;  %v2070_v12 = vmul.f32 0.5, %v2064_v24 }
0x1c30   :  { %v2078_v28 = vand.u32 2147483647, %v2072_v27  ;;  %v2073_v1 = vmul.f32 0.70710677, %v2067_v2  ;;  %vm2074_vm8 = vcmp.ge.f32.partialorder %v2072_v27, 0.0  ;;  %v2071_v41 = vmul.f32 0.5, %v2067_v2 }
0x1c31   :  { %v2076_v8 = vsel %vm2074_vm8, 1.0, %v2946_v56 }
0x1c32   :  { %v2080_v47 = vmul.f32 0.3275911, %v2078_v28  ;;  %v2079_v29 = vand.u32 2147483647, %v2073_v1  ;;  %v2104_v35 = vsub.f32 0.0, %v2078_v28  ;;  %vm2075_vm9 = vcmp.ge.f32.partialorder %v2073_v1, 0.0 }
0x1c33   :  { %v2077_v13 = vsel %vm2075_vm9, 1.0, %v2946_v56 }
0x1c34   :  { %v2082_v30 = vadd.f32 1.0, %v2080_v47  ;;  %v2081_v33 = vmul.f32 0.3275911, %v2079_v29  ;;  %v2105_v36 = vsub.f32 0.0, %v2079_v29  ;;  %v2106_v38 = vmul.f32 %v2104_v35, %v2078_v28 }
0x1c36   :  { %2867 = vrcp.f32 %v2082_v30  ;;  %v2083_v34 = vadd.f32 1.0, %v2081_v33  ;;  %v2107_v43 = vmul.f32 %v2105_v36, %v2079_v29  ;;  %v2108_v44 = vmul.f32 1.442695, %v2106_v38 }
0x1c38   :  { %2869 = vrcp.f32 %v2083_v34  ;;  %v2110_v51 = vmul.f32 1.442695, %v2107_v43 }
0x1c39   :  { %2871 = vpow2.f32 %v2108_v44  ;;  %v2459_v44 = vld [vmem:[%s3552_s14 + $0x1] ss:$0 sm:$0xff] }
0x1c3a   :  { %2873 = vpow2.f32 %v2110_v51 }
0x1c40   :  { %v2868_v37 = vpop.eup %2867 }
0x1c41   :  { %v2086_v39 = vmul.f32 1.0614054, %v2868_v37 }
0x1c42   :  { %v2870_v40 = vpop.eup %2869 }
0x1c43   :  { %v2088_v42 = vadd.f32 -1.4531521, %v2086_v39  ;;  %v2087_v45 = vmul.f32 1.0614054, %v2870_v40  ;;  %v2872_v48 = vpop.eup %2871 }
0x1c44   :  { %v2874_v6 = vpop.eup %2873 }
0x1c45   :  { %v2090_v31 = vmul.f32 %v2868_v37, %v2088_v42  ;;  %v2089_v32 = vadd.f32 -1.4531521, %v2087_v45 }
0x1c47   :  { %v2092_v50 = vadd.f32 1.4214138, %v2090_v31  ;;  %v2091_v52 = vmul.f32 %v2870_v40, %v2089_v32  ;;  %v2460_v31 = vld [vmem:[%s3553_s15 + $0x1] ss:$0 sm:$0xff] }
0x1c49   :  { %v2094_v53 = vmul.f32 %v2868_v37, %v2092_v50  ;;  %v2093_v54 = vadd.f32 1.4214138, %v2091_v52 }
0x1c4b   :  { %v2096_v55 = vadd.f32 -0.28449672, %v2094_v53  ;;  %v2095_v58 = vmul.f32 %v2870_v40, %v2093_v54 }
0x1c4d   :  { %v2098_v59 = vmul.f32 %v2868_v37, %v2096_v55  ;;  %v2097_v60 = vadd.f32 -0.28449672, %v2095_v58 }
0x1c4f   :  { %v2100_v61 = vadd.f32 0.2548296, %v2098_v59  ;;  %v2099_v62 = vmul.f32 %v2870_v40, %v2097_v60 }
0x1c51   :  { %v2102_v46 = vmul.f32 %v2868_v37, %v2100_v61  ;;  %v2101_v63 = vadd.f32 0.2548296, %v2099_v62 }
0x1c53   :  { %v2112_v0 = vmul.f32 %v2872_v48, %v2102_v46  ;;  %v2103_v5 = vmul.f32 %v2870_v40, %v2101_v63 }
0x1c55   :  { %v2114_v7 = vsub.f32 1.0, %v2112_v0  ;;  %v2113_v9 = vmul.f32 %v2874_v6, %v2103_v5 }
0x1c57   :  { %v2116_v10 = vmul.f32 %v2114_v7, %v2076_v8  ;;  %v2115_v11 = vsub.f32 1.0, %v2113_v9 }
0x1c59   :  { %v2118_v14 = vadd.f32 1.0, %v2116_v10  ;;  %v2117_v16 = vmul.f32 %v2115_v11, %v2077_v13 }
0x1c5b   :  { %v2119_v17 = vadd.f32 1.0, %v2117_v16  ;;  %v2120_v19 = vmul.f32 %v2118_v14, %v2070_v12 }
0x1c5d   :  { %v2121_v57 = vmul.f32 %v2119_v17, %v2071_v41  ;;  %v2777_v17 = vld [vmem:[%s3554_s16] sm:$0xff]  }
0x1c5e   :  { %2738 = vmatpush3.bf16.msra.mxu1 %v2777_v17 }
0x1c5f   :  { %v2122_v20 = vpack.c.bf16 %v2121_v57, %v2120_v19  ;;  %v2778_v19 = vld [vmem:[%s3554_s16 + $0x8] sm:$0xff]   ;;  %2739 = vmatprep.subr.bf16.mxu1 %v2933_v15  ;;  %s2947_s16 = smov [#allocation2]  }
0x1c60   :  { %s2347_s6 = sshll.u32 %s2947_s16, 4  ;;  %s2348_s6 = int_to_ptr.vmem [resolvable:$true] %s2347_s6 }
0x1c61   :  { %2734 = vmatmul.mubr.msk.bf16.vlgmr.msra.gmra.mrb[56].mxu0 %vm1083_vm7, %v2122_v20  ;;  %s2885_s7 = scalar_lea.vmem %s2348_s6, 32  ;;  %p2890_p1 = scmp.lt.s32.totalorder %s2348_s6, %s2348_s6 }
0x1c62   :  { %2740 = vmatpush3.bf16.msra.mxu1 %v2778_v19  ;;  %p2886_p0 = scmp.ne.s32.totalorder %s2348_s6, %s2885_s7  ;;  %p2891_p2 = scmp.lt.s32.totalorder %s2885_s7, %s2885_s7 }
0x1c64   :  { %p2892_p3 = por %p2891_p2, %p2890_p1 }
0x1c66   :  { %p2893_p4 = pnand %p2892_p3, %p2886_p0 }
0x1d34   :  { %v2190_v21 = vpop.f32.mrb[56].mxu0 }
0x1d35   :  { %v2191_v22 = vadd.f32 %v2453_v49, %v2190_v21  ;;  %v2735_v23 = vpop.f32.mrb[57].mxu0 }
0x1d36   :  { %v2193_v25 = vpop.f32.mrb[58].mxu0 }
0x1d37   :  { %v2194_v26 = vadd.f32 %v2453_v49, %v2193_v25  ;;  %v2736_v56 = vpop.f32.mrb[59].mxu0  ;;  %v2197_v27 = vadd.f32 %v2191_v22, %v3458_v4 }
0x1d39   :  { %v2199_v24 = vsel %vm65_vm0, %v2197_v27, 0.0  ;;  %v2198_v2 = vadd.f32 %v2194_v26, %v3460_v18 }
0x1d3a   :  { %2200 = vadd.xlane.f32.xlu0 %v2199_v24 }
0x1d3b   :  { %v2202_v3 = vsel %vm65_vm0, %v2198_v2, 0.0 }
0x1d3c   :  { %2203 = vadd.xlane.f32.xlu1 %v2202_v3 }
0x1dc7   :  { %v2201_v28 = vpop.xlane.xlu0 %2200 }
0x1dc8   :  { %v2205_v1 = vmul.f32 0.03125, %v2201_v28 }
0x1dc9   :  { %v2204_v47 = vpop.xlane.xlu1 %2203 }
0x1dca   :  { %v2206_v29 = vmul.f32 0.03125, %v2204_v47  ;;  %v2207_v30 = vsub.f32 %v2197_v27, %v2205_v1 }
0x1dcc   :  { %v2208_v33 = vsub.f32 %v2198_v2, %v2206_v29  ;;  %v2209_v36 = vmul.f32 %v2207_v30, %v2207_v30 }
0x1dce   :  { %v2210_v34 = vmul.f32 %v2208_v33, %v2208_v33  ;;  %v2211_v4 = vsel %vm65_vm0, %v2209_v36, 0.0 }
0x1dd0   :  { %v2214_v35 = vsel %vm65_vm0, %v2210_v34, 0.0 }
0x1dd1   :  { %2215 = vadd.xlane.f32.xlu0 %v2214_v35 }
0x1dd5   :  { %2212 = vadd.xlane.f32.xlu0 %v2211_v4 }
0x1e5e   :  { %v2216_v37 = vpop.xlane.xlu0 %2215 }
0x1e5f   :  { %v2218_v18 = vmul.f32 0.03125, %v2216_v37 }
0x1e61   :  { %v2220_v38 = vadd.f32 1e-12, %v2218_v18 }
0x1e62   :  { %v2213_v39 = vpop.xlane.xlu0 %2212 }
0x1e63   :  { %2875 = vrsqrt.f32 %v2220_v38  ;;  %v2217_v40 = vmul.f32 0.03125, %v2213_v39 }
0x1e65   :  { %v2219_v42 = vadd.f32 1e-12, %v2217_v40 }
0x1e67   :  { %2877 = vrsqrt.f32 %v2219_v42 }
0x1e6d   :  { %v2876_v43 = vpop.eup %2875 }
0x1e6e   :  { %v2224_v45 = vmul.f32 %v2876_v43, %v2208_v33 }
0x1e70   :  { %v2232_v32 = vmul.f32 %v2459_v44, %v2224_v45 }
0x1e71   :  { %v2878_v50 = vpop.eup %2877 }
0x1e72   :  { %v2223_v51 = vmul.f32 %v2878_v50, %v2207_v30  ;;  %v2240_v52 = vadd.f32 %v2460_v31, %v2232_v32 }
0x1e74   :  { %v2231_v53 = vmul.f32 %v2459_v44, %v2223_v51  ;;  %v2249_v54 = vsel %vm65_vm0, %v2240_v52, 0.0 }
0x1e75   :  { %v2250_v55 = vrot.slane %v2249_v54, 4 }
0x1e76   :  { %v2239_v58 = vadd.f32 %v2460_v31, %v2231_v53 }
0x1e77   :  { %v2251_v59 = vadd.f32 %v2250_v55, %v2249_v54 }
0x1e78   :  { %v2241_v60 = vsel %vm65_vm0, %v2239_v58, 0.0 }
0x1e79   :  { %v2242_v61 = vrot.slane %v2241_v60, 4  ;;  %v2252_v62 = vrot.slane %v2251_v59, 2 }
0x1e7b   :  { %v2243_v46 = vadd.f32 %v2242_v61, %v2241_v60  ;;  %v2253_v48 = vadd.f32 %v2252_v62, %v2251_v59 }
0x1e7d   :  { %v2244_v63 = vrot.slane %v2243_v46, 2  ;;  %v2254_v0 = vrot.slane %v2253_v48, 1 }
0x1e7f   :  { %v2245_v5 = vadd.f32 %v2244_v63, %v2243_v46  ;;  %v2255_v6 = vadd.f32 %v2254_v0, %v2253_v48 }
0x1e81   :  { %v2246_v7 = vrot.slane %v2245_v5, 1  ;;  %v2256_v8 = vsub.f32 %v2255_v6, %v2240_v52 }
0x1e83   :  { %v2247_v9 = vadd.f32 %v2246_v7, %v2245_v5  ;;  %v2258_v11 = vrot.slane %v2256_v8, 7 }
0x1e85   :  { %v2248_v10 = vsub.f32 %v2247_v9, %v2239_v58 }
0x1e87   :  { %v2261_v13 = vsel %vm2260_vm10, %v2248_v10, %v2258_v11 }
0x1e88   :  { %v2262_v14 = vmul.f32 0.14285715, %v2261_v13 }
0x1e8a   :  { %v2263_v16 = vmul.f32 %v2262_v14, %v2262_v14  ;;  %v2339_v12 = vsel %vm65_vm0, %v2262_v14, 0.0 }
0x1e8b   :  { %2340 = vst [vmem:[#allocation2] sm:$0x3] %v2339_v12 }
0x1e8c   :  { %v2265_v41 = vsel %vm2264_vm11, %v2263_v16, 0.0 }
0x1e8d   :  { %2266 = vadd.xlane.f32.xlu0 %v2265_v41 }
0x1f1a   :  { %v2267_v57 = vpop.xlane.xlu0 %2266 }
0x1f1b   :  { %2879 = vrsqrt.f32 %v2267_v57  ;;  %vm2270_vm12 = vcmp.eq.f32.partialorder %v2267_v57, inf  ;;  %v2273_v21 = vand.u32 2147483648, %v2267_v57  ;;  %vm2272_vm13 = vcmp.eq.f32.partialorder %v2267_v57, 0.0 }
0x1f25   :  { %v2880_v20 = vpop.eup %2879 }
0x1f26   :  { %v2269_v49 = vmul.f32 %v2880_v20, %v2267_v57 }
0x1f28   :  { %v2271_v22 = vsel %vm2270_vm12, %v2267_v57, %v2269_v49 }
0x1f29   :  { %v2274_v23 = vsel %vm2272_vm13, %v2273_v21, %v2271_v22 }
0x1f2a   :  { %v2275_v25 = vmax.f32 %v2274_v23, 1e-12 }
0x1f2c   :  { %2881 = vrcp.f32 %v2275_v25 }
0x1f36   :  { %v2882_v26 = vpop.eup %2881 }
0x1f37   :  { %v2277_v56 = vmul.f32 %v2882_v26, %v2262_v14 }
0x1f39   :  { %v2278_v27 = vpack.c.bf16 %v2277_v56, %v2277_v56 }
0x1f3b   :  { %2742 = vmatmul.mubr.msk.bf16.vlgmr.msra.gmra.mrb[60].mxu1 %vm65_vm0, %v2278_v27 }
0x1f3c   :  { %2896 = shalt.err (!%p2893_p4)
}
0x1f3d   :  { %s2897_s3 = scalar_lea.hbm %s3555_s17, 32 }
0x1f3e   :  { %p2898_p5 = scmp.ne.s32.totalorder %s3555_s17, %s2897_s3  ;;  %p2901_p6 = scmp.lt.u32.totalorder %s2897_s3, %s3555_s17 }
0x1f40   :  { %p2903_p7 = pnand %p2901_p6, %p2898_p5 }
0x1f42   :  { %2906 = shalt.err (!%p2903_p7)
}
0x1f43   :  { %2350 = dma.vmem_to_hbm [thread:$0]  %s2348_s6, 32, %s3555_s17, [#allocation3]  }
0x1f44   :  { %s2948_s22 = smov [#allocation4]  }
0x1f45   :  { %s2357_s2 = sshll.u32 %s2948_s22, 4  ;;  %s2358_s2 = int_to_ptr.vmem [resolvable:$true] %s2357_s2 }
0x1f46   :  { %s2907_s23 = scalar_lea.vmem %s2358_s2, 32  ;;  %p2912_p9 = scmp.lt.s32.totalorder %s2358_s2, %s2358_s2 }
0x1f47   :  { %p2908_p8 = scmp.ne.s32.totalorder %s2358_s2, %s2907_s23  ;;  %p2913_p10 = scmp.lt.s32.totalorder %s2907_s23, %s2907_s23 }
0x1f49   :  { %p2914_p11 = por %p2913_p10, %p2912_p9 }
0x1f4b   :  { %p2915_p12 = pnand %p2914_p11, %p2908_p8 }
0x200e   :  { %v2332_v15 = vpop.f32.mrb[60].mxu1 }
0x200f   :  { %2338 = vst [vmem:[#allocation4] sm:$0x3] %v2332_v15  ;;  %v2743_v24 = vpop.f32.mrb[61].mxu1 }
0x2010   :  { %v2335_v2 = vpop.f32.mrb[62].mxu1 }
0x2011   :  { %2918 = shalt.err (!%p2915_p12)
}
0x2012   :  { %s2919_s1 = scalar_lea.hbm %s3556_s18, 32 }
0x2013   :  { %p2920_p13 = scmp.ne.s32.totalorder %s3556_s18, %s2919_s1  ;;  %p2923_p0 = scmp.lt.u32.totalorder %s2919_s1, %s3556_s18 }
0x2015   :  { %p2925_p1 = pnand %p2923_p0, %p2920_p13 }
0x2017   :  { %2928 = shalt.err (!%p2925_p1)
}
0x2018   :  { %2360 = dma.vmem_to_hbm [thread:$0]  %s2358_s2, 32, %s3556_s18, [#allocation5]   ;;  %v2744_v3 = vpop.f32.mrb[63].mxu1 }
0x2019   :  { %2929 = dma.done.wait [#allocation3], 32  }
0x201a   :  { %2930 = vsyncadd [#allocation3], 4294967264 }
0x201b   :  { %2931 = dma.done.wait [#allocation5], 32  }
0x201c   :  { %2932 = vsyncadd [#allocation5], 4294967264 }
0x201d   :  { %2367 = vsyncpa [#allocation3], 1 }
0x201e   :  { %2368 = vsyncpa [#allocation5], 1 }

</bundles_post_ra>
